<compile_context>
chip_gen: v6e
topology: v6e:2x2x1
jax: 0.10.0
libtpu: 0.0.40
codegen_flags: <defaults>
</compile_context>

<pallas_src>
import jax
import jax.numpy as jnp
from jax.experimental import pallas as pl
from jax.experimental.pallas import tpu as pltpu

D = 2   # dim_size (two assets) -- hardcoded by the module's indexing
T = 8   # sequence length
B = 16  # batch_size

# rows of the packed constants table
_NC = 11  # [M, AL, KL, OL, AU, KU, OU, WIN, WH, WF1, WF2]


# ---------------------------------------------------------------------------
# Pallas kernel: whole sequential recurrence, vectorized over (D, 1, B) with
# all loop-invariant constants resident in vregs.
# ---------------------------------------------------------------------------
def _notrade_rnn_kernel(x_ref, ret_ref, c_ref, out_ref):
    # x_ref  : VMEM f32[D, T, B]        (input weights, module-native layout)
    # ret_ref: VMEM f32[D, T-1, B]      (returns_partition)
    # c_ref  : VMEM f32[NC, D, 1, 1]    (loop-invariant per-dim constants)
    # out_ref: VMEM f32[D, T, B]
    d, n_steps, b = x_ref.shape

    def relu(v):
        return jnp.maximum(v, 0.0)

    def swap(v):
        # Exchange the two asset rows.  Axis 0 is the leading (untiled) dim of
        # a (D, 1, B) value, so this is vreg selection, not a sublane shuffle.
        return jnp.concatenate([v[1:2], v[0:1]], axis=0)

    # Hoist all 11 loop-invariant constants into (D, 1, B) vregs ONCE (no
    # per-iteration broadcast_in_dim -- JAX does not CSE those).
    def cst(i):
        return jnp.broadcast_to(c_ref[i], (d, 1, b))

    M, AL, KL, OL = cst(0), cst(1), cst(2), cst(3)       # bound constants
    AU, KU, OU = cst(4), cst(5), cst(6)
    WIN, WH, WF1, WF2 = cst(7), cst(8), cst(9), cst(10)  # per-dim weights

    # step 0: hidden = input[:, 0, :]
    h = x_ref[:, 0:1, :]                       # (D, 1, B)
    out_ref[:, 0:1, :] = h

    # Fully unrolled at trace time (n_steps is static).
    for t in range(1, n_steps):
        r = ret_ref[:, t - 1:t, :]             # (D, 1, B)
        hr = h * r
        u = h + hr                             # h * (1 + r)
        hr_sw = swap(hr)                       # both swaps depend only on h, r:
        u_sw = swap(u)                         # off the reciprocal critical path

        # adjust_pi = h*(1+r) / (1 + sum_d h*r); the sum sits in both rows.
        denom = 1.0 + (hr + hr_sw)
        # EUP approx reciprocal + one Newton step (rel. err ~1e-7, keeps the
        # long-latency divide off the VPU chain while holding 1e-4 on v5e too).
        inv = pl.reciprocal(denom, approx=True)
        inv = inv * (2.0 - denom * inv)

        pi = u * inv                           # (D, 1, B)
        pi_cross = u_sw * inv                  # bound for asset d uses asset 1-d

        # bound = O - relu(K - relu((pi_cross - A) * M)), both dims at once.
        lb = OL - relu(KL - relu((pi_cross - AL) * M))
        ub = OU - relu(KU - relu((pi_cross - AU) * M))

        # Recurrence (per-dim scalar weights; hidden/input size 1).
        ig = WIN * x_ref[:, t:t + 1, :] + WH * pi - lb
        ig2 = WF1 * relu(ig) + ub - lb
        h = WF2 * relu(ig2) + ub

        out_ref[:, t:t + 1, :] = h             # static-offset sublane store


def _run_kernel(x_dtb, ret_dtb, consts):
    d, t, b = x_dtb.shape
    return pl.pallas_call(
        _notrade_rnn_kernel,
        out_shape=jax.ShapeDtypeStruct((d, t, b), jnp.float32),
        in_specs=[
            pl.BlockSpec(memory_space=pltpu.MemorySpace.VMEM),
            pl.BlockSpec(memory_space=pltpu.MemorySpace.VMEM),
            pl.BlockSpec(memory_space=pltpu.MemorySpace.VMEM),
        ],
        out_specs=pl.BlockSpec(memory_space=pltpu.MemorySpace.VMEM),
    )(x_dtb, ret_dtb, consts)


# ---------------------------------------------------------------------------
# Glue: precompute all loop-invariant derived constants (tiny scalar work,
# fuses into one XLA fusion).  No layout transposes, no broadcast buffers.
# ---------------------------------------------------------------------------
def notrade_region_rnn(x, returns_partition, target, params):
    """x: (D, T, B), returns_partition: (D, T-1, B), target: (D,).

    Returns (output, hidden) matching the PyTorch module:
      output: (D, T, B), hidden: (D, 1, B).
    The `hidden` forward argument of the PyTorch module is unused (it is
    overwritten at step 0), so it is omitted here.
    """
    W = params["rotate_w"]           # (2, 2)
    b_hidden = params["hidden_b"]    # (2,)
    w_in = params["input_w"].reshape(D)
    w_h = params["hidden_w"].reshape(D)
    w_f1 = params["fc1_w"].reshape(D)
    w_f2 = params["fc2_w"].reshape(D)

    # corner():  Corner = (W @ (index_matrix @ bias).T).T + target
    im = jnp.asarray(
        [[[-1.0, 0.0], [0.0, -1.0]],
         [[-1.0, 0.0], [0.0, 1.0]],
         [[1.0, 0.0], [0.0, 1.0]],
         [[1.0, 0.0], [0.0, -1.0]]],
        dtype=jnp.float32,
    )
    res = jnp.einsum("kij,j->ki", im, b_hidden)      # (4, 2)
    C = (W @ res.T).T + target                        # (4, 2)
    ac = W[1, 0] / W[0, 0]
    bd = W[0, 1] / W[1, 1]

    bd_ge = (bd >= 0).astype(jnp.float32)
    bd_lt = 1.0 - bd_ge
    ac_ge = (ac >= 0).astype(jnp.float32)
    ac_lt = 1.0 - ac_ge

    # Per-dim (x, y) loop-invariant constants of the four bound formulas.
    M  = jnp.stack([bd, ac])
    AL = jnp.stack([C[0, 1] * bd_ge + C[1, 1] * bd_lt,
                    C[0, 0] * ac_ge + C[3, 0] * ac_lt])
    KL = jnp.stack([jnp.abs(C[1, 0] - C[0, 0]),
                    jnp.abs(C[0, 1] - C[3, 1])])
    OL = jnp.stack([C[1, 0] * bd_ge + C[0, 0] * bd_lt,
                    C[3, 1] * ac_ge + C[0, 1] * ac_lt])
    AU = jnp.stack([C[3, 1] * bd_ge + C[2, 1] * bd_lt,
                    C[1, 0] * ac_ge + C[2, 0] * ac_lt])
    KU = jnp.stack([jnp.abs(C[2, 0] - C[3, 0]),
                    jnp.abs(C[1, 1] - C[2, 1])])
    OU = jnp.stack([C[2, 0] * bd_ge + C[3, 0] * bd_lt,
                    C[2, 1] * ac_ge + C[1, 1] * ac_lt])

    cmat = jnp.stack([M, AL, KL, OL, AU, KU, OU,
                      w_in, w_h, w_f1, w_f2]).astype(jnp.float32)   # (NC, D)
    consts = cmat[:, :, None, None]                                  # (NC, D, 1, 1)

    out = _run_kernel(x.astype(jnp.float32),
                      returns_partition.astype(jnp.float32),
                      consts)                                        # (D, T, B)
    hidden = out[:, -1:, :]                                          # (D, 1, B)
    return out, hidden


notrade_region_rnn_jit = jax.jit(notrade_region_rnn)


# ---------------------------------------------------------------------------
# Pure-JAX reference (mirrors the PyTorch forward) for verification.
# ---------------------------------------------------------------------------
def reference_forward(x, returns_partition, target, params):
    W = params["rotate_w"]
    b_hidden = params["hidden_b"]
    w_in = params["input_w"].reshape(D, 1, 1)
    w_h = params["hidden_w"].reshape(D, 1, 1)
    w_f1 = params["fc1_w"].reshape(D, 1, 1)
    w_f2 = params["fc2_w"].reshape(D, 1, 1)
    d, t, b = x.shape

    im = jnp.asarray(
        [[[-1.0, 0.0], [0.0, -1.0]],
         [[-1.0, 0.0], [0.0, 1.0]],
         [[1.0, 0.0], [0.0, 1.0]],
         [[1.0, 0.0], [0.0, -1.0]]],
        dtype=jnp.float32,
    )
    res = jnp.einsum("kij,j->ki", im, b_hidden)
    C = (W @ res.T).T + target
    ac = W[1, 0] / W[0, 0]
    bd = W[0, 1] / W[1, 1]
    relu = lambda v: jnp.maximum(v, 0.0)
    bd_ge = (bd >= 0).astype(jnp.float32)
    bd_lt = 1.0 - bd_ge
    ac_ge = (ac >= 0).astype(jnp.float32)
    ac_lt = 1.0 - ac_ge

    def lower_bound(h):
        h2 = h[:, 0, :]
        ing = (h2[1] - C[0, 1] * bd_ge - C[1, 1] * bd_lt) * bd
        ing2 = -relu(ing) + jnp.abs(C[1, 0] - C[0, 0])
        lx = -relu(ing2) + C[1, 0] * bd_ge + C[0, 0] * bd_lt
        ing = (h2[0] - C[0, 0] * ac_ge - C[3, 0] * ac_lt) * ac
        ing2 = -relu(ing) + jnp.abs(C[0, 1] - C[3, 1])
        ly = -relu(ing2) + C[3, 1] * ac_ge + C[0, 1] * ac_lt
        return jnp.stack([lx, ly]).reshape(d, 1, b)

    def upper_bound(h):
        h2 = h[:, 0, :]
        ing = (h2[1] - C[3, 1] * bd_ge - C[2, 1] * bd_lt) * bd
        ing2 = -relu(ing) + jnp.abs(C[2, 0] - C[3, 0])
        ux = -relu(ing2) + C[2, 0] * bd_ge + C[3, 0] * bd_lt
        ing = (h2[0] - C[1, 0] * ac_ge - C[2, 0] * ac_lt) * ac
        ing2 = -relu(ing) + jnp.abs(C[1, 1] - C[2, 1])
        uy = -relu(ing2) + C[2, 1] * ac_ge + C[1, 1] * ac_lt
        return jnp.stack([ux, uy]).reshape(d, 1, b)

    def recurrence(inp, hidden):
        lb = lower_bound(hidden)
        ub = upper_bound(hidden)
        ing = w_in * inp + w_h * hidden - lb
        ing2 = w_f1 * relu(ing) + ub - lb
        return w_f2 * relu(ing2) + ub

    outs = []
    hidden = x[:, 0, :].reshape(d, 1, b)
    outs.append(hidden)
    for i in range(1, t):
        r = returns_partition[:, i - 1, :].reshape(d, 1, b)
        adj = hidden * (1.0 + r) / (1.0 + jnp.sum(hidden * r, axis=0))
        hidden = recurrence(x[:, i, :].reshape(d, 1, b), adj)
        outs.append(hidden)
    return jnp.concatenate(outs, axis=1), hidden


if __name__ == "__main__":
    key = jax.random.PRNGKey(0)
    ks = jax.random.split(key, 9)

    # Deterministic synthetic parameters (shapes from nn.Linear in __init__):
    #   input_param/hidden_param/fc1/fc2 weights: (dim_size, 1), hidden bias: (dim_size,)
    #   rotate_param weight: (dim_size, dim_size)
    params = {
        "input_w": jax.random.uniform(ks[0], (D, 1), jnp.float32, -1.0, 1.0),
        "hidden_w": jax.random.uniform(ks[1], (D, 1), jnp.float32, -1.0, 1.0),
        "hidden_b": jax.random.uniform(ks[2], (D,), jnp.float32, -1.0, 1.0),
        "fc1_w": jax.random.uniform(ks[3], (D, 1), jnp.float32, -1.0, 1.0),
        "fc2_w": jax.random.uniform(ks[4], (D, 1), jnp.float32, -1.0, 1.0),
        # keep the diagonal away from zero (ac, bd divide by it)
        "rotate_w": jax.random.uniform(ks[5], (D, D), jnp.float32, -0.5, 0.5)
        + jnp.eye(D, dtype=jnp.float32),
    }

    x = jax.random.uniform(ks[6], (D, T, B), jnp.float32, 0.0, 1.0)          # portfolio weights
    returns = jax.random.uniform(ks[7], (D, T - 1, B), jnp.float32, -0.05, 0.05)
    target = jax.random.uniform(ks[8], (D,), jnp.float32, 0.2, 0.8)

    out, hidden = notrade_region_rnn_jit(x, returns, target, params)
    out = jax.block_until_ready(out)
    hidden = jax.block_until_ready(hidden)

    out_ref, hidden_ref = reference_forward(x, returns, target, params)

    assert out.shape == (D, T, B) and hidden.shape == (D, 1, B)
    assert jnp.allclose(out, out_ref, atol=1e-4, rtol=1e-4)
    assert jnp.allclose(hidden, hidden_ref, atol=1e-4, rtol=1e-4)

    print("KERNEL_OK")
</pallas_src>

<mosaic_0001>
module attributes {stable_mosaic.version = 11 : i64} {
  func.func @_notrade_rnn_kernel(%arg0: memref<2x8x16xf32, #tpu.memory_space<vmem>>, %arg1: memref<2x7x16xf32, #tpu.memory_space<vmem>>, %arg2: memref<11x2x1x1xf32, #tpu.memory_space<vmem>>, %arg3: memref<2x8x16xf32, #tpu.memory_space<vmem>>) attributes {dimension_semantics = [], scalar_prefetch = 0 : i64, scratch_operands = 0 : i64, tpu.core_type = #tpu.core_type<tc>} {
    %c0 = arith.constant 0 : index
    %c0_0 = arith.constant 0 : index
    %c0_1 = arith.constant 0 : index
    %c0_2 = arith.constant 0 : index
    %0 = vector.load %arg2[%c0, %c0_0, %c0_1, %c0_2] : memref<11x2x1x1xf32, #tpu.memory_space<vmem>>, vector<1x2x1x1xf32>
    %1 = vector.shape_cast %0 : vector<1x2x1x1xf32> to vector<2x1x1xf32>
    %2 = vector.shape_cast %1 : vector<2x1x1xf32> to vector<2x1x1xf32>
    %3 = vector.broadcast %2 : vector<2x1x1xf32> to vector<2x1x16xf32>
    %c1 = arith.constant 1 : index
    %c0_3 = arith.constant 0 : index
    %c0_4 = arith.constant 0 : index
    %c0_5 = arith.constant 0 : index
    %4 = vector.load %arg2[%c1, %c0_3, %c0_4, %c0_5] : memref<11x2x1x1xf32, #tpu.memory_space<vmem>>, vector<1x2x1x1xf32>
    %5 = vector.shape_cast %4 : vector<1x2x1x1xf32> to vector<2x1x1xf32>
    %6 = vector.shape_cast %5 : vector<2x1x1xf32> to vector<2x1x1xf32>
    %7 = vector.broadcast %6 : vector<2x1x1xf32> to vector<2x1x16xf32>
    %c2 = arith.constant 2 : index
    %c0_6 = arith.constant 0 : index
    %c0_7 = arith.constant 0 : index
    %c0_8 = arith.constant 0 : index
    %8 = vector.load %arg2[%c2, %c0_6, %c0_7, %c0_8] : memref<11x2x1x1xf32, #tpu.memory_space<vmem>>, vector<1x2x1x1xf32>
    %9 = vector.shape_cast %8 : vector<1x2x1x1xf32> to vector<2x1x1xf32>
    %10 = vector.shape_cast %9 : vector<2x1x1xf32> to vector<2x1x1xf32>
    %11 = vector.broadcast %10 : vector<2x1x1xf32> to vector<2x1x16xf32>
    %c3 = arith.constant 3 : index
    %c0_9 = arith.constant 0 : index
    %c0_10 = arith.constant 0 : index
    %c0_11 = arith.constant 0 : index
    %12 = vector.load %arg2[%c3, %c0_9, %c0_10, %c0_11] : memref<11x2x1x1xf32, #tpu.memory_space<vmem>>, vector<1x2x1x1xf32>
    %13 = vector.shape_cast %12 : vector<1x2x1x1xf32> to vector<2x1x1xf32>
    %14 = vector.shape_cast %13 : vector<2x1x1xf32> to vector<2x1x1xf32>
    %15 = vector.broadcast %14 : vector<2x1x1xf32> to vector<2x1x16xf32>
    %c4 = arith.constant 4 : index
    %c0_12 = arith.constant 0 : index
    %c0_13 = arith.constant 0 : index
    %c0_14 = arith.constant 0 : index
    %16 = vector.load %arg2[%c4, %c0_12, %c0_13, %c0_14] : memref<11x2x1x1xf32, #tpu.memory_space<vmem>>, vector<1x2x1x1xf32>
    %17 = vector.shape_cast %16 : vector<1x2x1x1xf32> to vector<2x1x1xf32>
    %18 = vector.shape_cast %17 : vector<2x1x1xf32> to vector<2x1x1xf32>
    %19 = vector.broadcast %18 : vector<2x1x1xf32> to vector<2x1x16xf32>
    %c5 = arith.constant 5 : index
    %c0_15 = arith.constant 0 : index
    %c0_16 = arith.constant 0 : index
    %c0_17 = arith.constant 0 : index
    %20 = vector.load %arg2[%c5, %c0_15, %c0_16, %c0_17] : memref<11x2x1x1xf32, #tpu.memory_space<vmem>>, vector<1x2x1x1xf32>
    %21 = vector.shape_cast %20 : vector<1x2x1x1xf32> to vector<2x1x1xf32>
    %22 = vector.shape_cast %21 : vector<2x1x1xf32> to vector<2x1x1xf32>
    %23 = vector.broadcast %22 : vector<2x1x1xf32> to vector<2x1x16xf32>
    %c6 = arith.constant 6 : index
    %c0_18 = arith.constant 0 : index
    %c0_19 = arith.constant 0 : index
    %c0_20 = arith.constant 0 : index
    %24 = vector.load %arg2[%c6, %c0_18, %c0_19, %c0_20] : memref<11x2x1x1xf32, #tpu.memory_space<vmem>>, vector<1x2x1x1xf32>
    %25 = vector.shape_cast %24 : vector<1x2x1x1xf32> to vector<2x1x1xf32>
    %26 = vector.shape_cast %25 : vector<2x1x1xf32> to vector<2x1x1xf32>
    %27 = vector.broadcast %26 : vector<2x1x1xf32> to vector<2x1x16xf32>
    %c7 = arith.constant 7 : index
    %c0_21 = arith.constant 0 : index
    %c0_22 = arith.constant 0 : index
    %c0_23 = arith.constant 0 : index
    %28 = vector.load %arg2[%c7, %c0_21, %c0_22, %c0_23] : memref<11x2x1x1xf32, #tpu.memory_space<vmem>>, vector<1x2x1x1xf32>
    %29 = vector.shape_cast %28 : vector<1x2x1x1xf32> to vector<2x1x1xf32>
    %30 = vector.shape_cast %29 : vector<2x1x1xf32> to vector<2x1x1xf32>
    %31 = vector.broadcast %30 : vector<2x1x1xf32> to vector<2x1x16xf32>
    %c8 = arith.constant 8 : index
    %c0_24 = arith.constant 0 : index
    %c0_25 = arith.constant 0 : index
    %c0_26 = arith.constant 0 : index
    %32 = vector.load %arg2[%c8, %c0_24, %c0_25, %c0_26] : memref<11x2x1x1xf32, #tpu.memory_space<vmem>>, vector<1x2x1x1xf32>
    %33 = vector.shape_cast %32 : vector<1x2x1x1xf32> to vector<2x1x1xf32>
    %34 = vector.shape_cast %33 : vector<2x1x1xf32> to vector<2x1x1xf32>
    %35 = vector.broadcast %34 : vector<2x1x1xf32> to vector<2x1x16xf32>
    %c9 = arith.constant 9 : index
    %c0_27 = arith.constant 0 : index
    %c0_28 = arith.constant 0 : index
    %c0_29 = arith.constant 0 : index
    %36 = vector.load %arg2[%c9, %c0_27, %c0_28, %c0_29] : memref<11x2x1x1xf32, #tpu.memory_space<vmem>>, vector<1x2x1x1xf32>
    %37 = vector.shape_cast %36 : vector<1x2x1x1xf32> to vector<2x1x1xf32>
    %38 = vector.shape_cast %37 : vector<2x1x1xf32> to vector<2x1x1xf32>
    %39 = vector.broadcast %38 : vector<2x1x1xf32> to vector<2x1x16xf32>
    %c10 = arith.constant 10 : index
    %c0_30 = arith.constant 0 : index
    %c0_31 = arith.constant 0 : index
    %c0_32 = arith.constant 0 : index
    %40 = vector.load %arg2[%c10, %c0_30, %c0_31, %c0_32] : memref<11x2x1x1xf32, #tpu.memory_space<vmem>>, vector<1x2x1x1xf32>
    %41 = vector.shape_cast %40 : vector<1x2x1x1xf32> to vector<2x1x1xf32>
    %42 = vector.shape_cast %41 : vector<2x1x1xf32> to vector<2x1x1xf32>
    %43 = vector.broadcast %42 : vector<2x1x1xf32> to vector<2x1x16xf32>
    %c0_33 = arith.constant 0 : index
    %c0_34 = arith.constant 0 : index
    %c0_35 = arith.constant 0 : index
    %44 = vector.load %arg0[%c0_33, %c0_34, %c0_35] : memref<2x8x16xf32, #tpu.memory_space<vmem>>, vector<2x1x16xf32>
    %c0_36 = arith.constant 0 : index
    %c0_37 = arith.constant 0 : index
    %c0_38 = arith.constant 0 : index
    %45 = vector.load %arg3[%c0_36, %c0_37, %c0_38] : memref<2x8x16xf32, #tpu.memory_space<vmem>>, vector<2x1x16xf32>
    tpu.vector_store %arg3[%c0_36, %c0_37, %c0_38], %44 {strides = array<i32>} : memref<2x8x16xf32, #tpu.memory_space<vmem>>, vector<2x1x16xf32>,
    %c0_39 = arith.constant 0 : index
    %c0_40 = arith.constant 0 : index
    %c0_41 = arith.constant 0 : index
    %46 = vector.load %arg1[%c0_39, %c0_40, %c0_41] : memref<2x7x16xf32, #tpu.memory_space<vmem>>, vector<2x1x16xf32>
    %47 = arith.mulf %44, %46 : vector<2x1x16xf32>
    %48 = arith.addf %44, %47 : vector<2x1x16xf32>
    %49 = vector.extract_strided_slice %47 {offsets = [1, 0, 0], sizes = [1, 1, 16], strides = [1, 1, 1]} : vector<2x1x16xf32> to vector<1x1x16xf32>
    %50 = vector.extract_strided_slice %47 {offsets = [0, 0, 0], sizes = [1, 1, 16], strides = [1, 1, 1]} : vector<2x1x16xf32> to vector<1x1x16xf32>
    %51 = tpu.concatenate %49, %50 in 0 : vector<1x1x16xf32>, vector<1x1x16xf32> -> vector<2x1x16xf32>
    %52 = vector.extract_strided_slice %48 {offsets = [1, 0, 0], sizes = [1, 1, 16], strides = [1, 1, 1]} : vector<2x1x16xf32> to vector<1x1x16xf32>
    %53 = vector.extract_strided_slice %48 {offsets = [0, 0, 0], sizes = [1, 1, 16], strides = [1, 1, 1]} : vector<2x1x16xf32> to vector<1x1x16xf32>
    %54 = tpu.concatenate %52, %53 in 0 : vector<1x1x16xf32>, vector<1x1x16xf32> -> vector<2x1x16xf32>
    %55 = arith.addf %47, %51 : vector<2x1x16xf32>
    %cst = arith.constant 1.000000e+00 : f32
    %56 = vector.broadcast %cst : f32 to vector<2x1x16xf32>
    %57 = arith.addf %56, %55 : vector<2x1x16xf32>
    %58 = tpu.reciprocal %57 {approx = true} : vector<2x1x16xf32> -> vector<2x1x16xf32>
    %59 = arith.mulf %57, %58 : vector<2x1x16xf32>
    %cst_42 = arith.constant 2.000000e+00 : f32
    %60 = vector.broadcast %cst_42 : f32 to vector<2x1x16xf32>
    %61 = arith.subf %60, %59 : vector<2x1x16xf32>
    %62 = arith.mulf %58, %61 : vector<2x1x16xf32>
    %63 = arith.mulf %48, %62 : vector<2x1x16xf32>
    %64 = arith.mulf %54, %62 : vector<2x1x16xf32>
    %65 = arith.subf %64, %7 : vector<2x1x16xf32>
    %66 = arith.mulf %65, %3 : vector<2x1x16xf32>
    %cst_43 = arith.constant 0.000000e+00 : f32
    %67 = vector.broadcast %cst_43 : f32 to vector<2x1x16xf32>
    %68 = arith.maximumf %66, %67 : vector<2x1x16xf32>
    %69 = arith.subf %11, %68 : vector<2x1x16xf32>
    %cst_44 = arith.constant 0.000000e+00 : f32
    %70 = vector.broadcast %cst_44 : f32 to vector<2x1x16xf32>
    %71 = arith.maximumf %69, %70 : vector<2x1x16xf32>
    %72 = arith.subf %15, %71 : vector<2x1x16xf32>
    %73 = arith.subf %64, %19 : vector<2x1x16xf32>
    %74 = arith.mulf %73, %3 : vector<2x1x16xf32>
    %cst_45 = arith.constant 0.000000e+00 : f32
    %75 = vector.broadcast %cst_45 : f32 to vector<2x1x16xf32>
    %76 = arith.maximumf %74, %75 : vector<2x1x16xf32>
    %77 = arith.subf %23, %76 : vector<2x1x16xf32>
    %cst_46 = arith.constant 0.000000e+00 : f32
    %78 = vector.broadcast %cst_46 : f32 to vector<2x1x16xf32>
    %79 = arith.maximumf %77, %78 : vector<2x1x16xf32>
    %80 = arith.subf %27, %79 : vector<2x1x16xf32>
    %c0_47 = arith.constant 0 : index
    %c1_48 = arith.constant 1 : index
    %c0_49 = arith.constant 0 : index
    %81 = vector.load %arg0[%c0_47, %c1_48, %c0_49] : memref<2x8x16xf32, #tpu.memory_space<vmem>>, vector<2x1x16xf32>
    %82 = arith.mulf %31, %81 : vector<2x1x16xf32>
    %83 = arith.mulf %35, %63 : vector<2x1x16xf32>
    %84 = arith.addf %82, %83 : vector<2x1x16xf32>
    %85 = arith.subf %84, %72 : vector<2x1x16xf32>
    %cst_50 = arith.constant 0.000000e+00 : f32
    %86 = vector.broadcast %cst_50 : f32 to vector<2x1x16xf32>
    %87 = arith.maximumf %85, %86 : vector<2x1x16xf32>
    %88 = arith.mulf %39, %87 : vector<2x1x16xf32>
    %89 = arith.addf %88, %80 : vector<2x1x16xf32>
    %90 = arith.subf %89, %72 : vector<2x1x16xf32>
    %cst_51 = arith.constant 0.000000e+00 : f32
    %91 = vector.broadcast %cst_51 : f32 to vector<2x1x16xf32>
    %92 = arith.maximumf %90, %91 : vector<2x1x16xf32>
    %93 = arith.mulf %43, %92 : vector<2x1x16xf32>
    %94 = arith.addf %93, %80 : vector<2x1x16xf32>
    %c0_52 = arith.constant 0 : index
    %c1_53 = arith.constant 1 : index
    %c0_54 = arith.constant 0 : index
    %95 = vector.load %arg3[%c0_52, %c1_53, %c0_54] : memref<2x8x16xf32, #tpu.memory_space<vmem>>, vector<2x1x16xf32>
    tpu.vector_store %arg3[%c0_52, %c1_53, %c0_54], %94 {strides = array<i32>} : memref<2x8x16xf32, #tpu.memory_space<vmem>>, vector<2x1x16xf32>,
    %c0_55 = arith.constant 0 : index
    %c1_56 = arith.constant 1 : index
    %c0_57 = arith.constant 0 : index
    %96 = vector.load %arg1[%c0_55, %c1_56, %c0_57] : memref<2x7x16xf32, #tpu.memory_space<vmem>>, vector<2x1x16xf32>
    %97 = arith.mulf %94, %96 : vector<2x1x16xf32>
    %98 = arith.addf %94, %97 : vector<2x1x16xf32>
    %99 = vector.extract_strided_slice %97 {offsets = [1, 0, 0], sizes = [1, 1, 16], strides = [1, 1, 1]} : vector<2x1x16xf32> to vector<1x1x16xf32>
    %100 = vector.extract_strided_slice %97 {offsets = [0, 0, 0], sizes = [1, 1, 16], strides = [1, 1, 1]} : vector<2x1x16xf32> to vector<1x1x16xf32>
    %101 = tpu.concatenate %99, %100 in 0 : vector<1x1x16xf32>, vector<1x1x16xf32> -> vector<2x1x16xf32>
    %102 = vector.extract_strided_slice %98 {offsets = [1, 0, 0], sizes = [1, 1, 16], strides = [1, 1, 1]} : vector<2x1x16xf32> to vector<1x1x16xf32>
    %103 = vector.extract_strided_slice %98 {offsets = [0, 0, 0], sizes = [1, 1, 16], strides = [1, 1, 1]} : vector<2x1x16xf32> to vector<1x1x16xf32>
    %104 = tpu.concatenate %102, %103 in 0 : vector<1x1x16xf32>, vector<1x1x16xf32> -> vector<2x1x16xf32>
    %105 = arith.addf %97, %101 : vector<2x1x16xf32>
    %cst_58 = arith.constant 1.000000e+00 : f32
    %106 = vector.broadcast %cst_58 : f32 to vector<2x1x16xf32>
    %107 = arith.addf %106, %105 : vector<2x1x16xf32>
    %108 = tpu.reciprocal %107 {approx = true} : vector<2x1x16xf32> -> vector<2x1x16xf32>
    %109 = arith.mulf %107, %108 : vector<2x1x16xf32>
    %cst_59 = arith.constant 2.000000e+00 : f32
    %110 = vector.broadcast %cst_59 : f32 to vector<2x1x16xf32>
    %111 = arith.subf %110, %109 : vector<2x1x16xf32>
    %112 = arith.mulf %108, %111 : vector<2x1x16xf32>
    %113 = arith.mulf %98, %112 : vector<2x1x16xf32>
    %114 = arith.mulf %104, %112 : vector<2x1x16xf32>
    %115 = arith.subf %114, %7 : vector<2x1x16xf32>
    %116 = arith.mulf %115, %3 : vector<2x1x16xf32>
    %cst_60 = arith.constant 0.000000e+00 : f32
    %117 = vector.broadcast %cst_60 : f32 to vector<2x1x16xf32>
    %118 = arith.maximumf %116, %117 : vector<2x1x16xf32>
    %119 = arith.subf %11, %118 : vector<2x1x16xf32>
    %cst_61 = arith.constant 0.000000e+00 : f32
    %120 = vector.broadcast %cst_61 : f32 to vector<2x1x16xf32>
    %121 = arith.maximumf %119, %120 : vector<2x1x16xf32>
    %122 = arith.subf %15, %121 : vector<2x1x16xf32>
    %123 = arith.subf %114, %19 : vector<2x1x16xf32>
    %124 = arith.mulf %123, %3 : vector<2x1x16xf32>
    %cst_62 = arith.constant 0.000000e+00 : f32
    %125 = vector.broadcast %cst_62 : f32 to vector<2x1x16xf32>
    %126 = arith.maximumf %124, %125 : vector<2x1x16xf32>
    %127 = arith.subf %23, %126 : vector<2x1x16xf32>
    %cst_63 = arith.constant 0.000000e+00 : f32
    %128 = vector.broadcast %cst_63 : f32 to vector<2x1x16xf32>
    %129 = arith.maximumf %127, %128 : vector<2x1x16xf32>
    %130 = arith.subf %27, %129 : vector<2x1x16xf32>
    %c0_64 = arith.constant 0 : index
    %c2_65 = arith.constant 2 : index
    %c0_66 = arith.constant 0 : index
    %131 = vector.load %arg0[%c0_64, %c2_65, %c0_66] : memref<2x8x16xf32, #tpu.memory_space<vmem>>, vector<2x1x16xf32>
    %132 = arith.mulf %31, %131 : vector<2x1x16xf32>
    %133 = arith.mulf %35, %113 : vector<2x1x16xf32>
    %134 = arith.addf %132, %133 : vector<2x1x16xf32>
    %135 = arith.subf %134, %122 : vector<2x1x16xf32>
    %cst_67 = arith.constant 0.000000e+00 : f32
    %136 = vector.broadcast %cst_67 : f32 to vector<2x1x16xf32>
    %137 = arith.maximumf %135, %136 : vector<2x1x16xf32>
    %138 = arith.mulf %39, %137 : vector<2x1x16xf32>
    %139 = arith.addf %138, %130 : vector<2x1x16xf32>
    %140 = arith.subf %139, %122 : vector<2x1x16xf32>
    %cst_68 = arith.constant 0.000000e+00 : f32
    %141 = vector.broadcast %cst_68 : f32 to vector<2x1x16xf32>
    %142 = arith.maximumf %140, %141 : vector<2x1x16xf32>
    %143 = arith.mulf %43, %142 : vector<2x1x16xf32>
    %144 = arith.addf %143, %130 : vector<2x1x16xf32>
    %c0_69 = arith.constant 0 : index
    %c2_70 = arith.constant 2 : index
    %c0_71 = arith.constant 0 : index
    %145 = vector.load %arg3[%c0_69, %c2_70, %c0_71] : memref<2x8x16xf32, #tpu.memory_space<vmem>>, vector<2x1x16xf32>
    tpu.vector_store %arg3[%c0_69, %c2_70, %c0_71], %144 {strides = array<i32>} : memref<2x8x16xf32, #tpu.memory_space<vmem>>, vector<2x1x16xf32>,
    %c0_72 = arith.constant 0 : index
    %c2_73 = arith.constant 2 : index
    %c0_74 = arith.constant 0 : index
    %146 = vector.load %arg1[%c0_72, %c2_73, %c0_74] : memref<2x7x16xf32, #tpu.memory_space<vmem>>, vector<2x1x16xf32>
    %147 = arith.mulf %144, %146 : vector<2x1x16xf32>
    %148 = arith.addf %144, %147 : vector<2x1x16xf32>
    %149 = vector.extract_strided_slice %147 {offsets = [1, 0, 0], sizes = [1, 1, 16], strides = [1, 1, 1]} : vector<2x1x16xf32> to vector<1x1x16xf32>
    %150 = vector.extract_strided_slice %147 {offsets = [0, 0, 0], sizes = [1, 1, 16], strides = [1, 1, 1]} : vector<2x1x16xf32> to vector<1x1x16xf32>
    %151 = tpu.concatenate %149, %150 in 0 : vector<1x1x16xf32>, vector<1x1x16xf32> -> vector<2x1x16xf32>
    %152 = vector.extract_strided_slice %148 {offsets = [1, 0, 0], sizes = [1, 1, 16], strides = [1, 1, 1]} : vector<2x1x16xf32> to vector<1x1x16xf32>
    %153 = vector.extract_strided_slice %148 {offsets = [0, 0, 0], sizes = [1, 1, 16], strides = [1, 1, 1]} : vector<2x1x16xf32> to vector<1x1x16xf32>
    %154 = tpu.concatenate %152, %153 in 0 : vector<1x1x16xf32>, vector<1x1x16xf32> -> vector<2x1x16xf32>
    %155 = arith.addf %147, %151 : vector<2x1x16xf32>
    %cst_75 = arith.constant 1.000000e+00 : f32
    %156 = vector.broadcast %cst_75 : f32 to vector<2x1x16xf32>
    %157 = arith.addf %156, %155 : vector<2x1x16xf32>
    %158 = tpu.reciprocal %157 {approx = true} : vector<2x1x16xf32> -> vector<2x1x16xf32>
    %159 = arith.mulf %157, %158 : vector<2x1x16xf32>
    %cst_76 = arith.constant 2.000000e+00 : f32
    %160 = vector.broadcast %cst_76 : f32 to vector<2x1x16xf32>
    %161 = arith.subf %160, %159 : vector<2x1x16xf32>
    %162 = arith.mulf %158, %161 : vector<2x1x16xf32>
    %163 = arith.mulf %148, %162 : vector<2x1x16xf32>
    %164 = arith.mulf %154, %162 : vector<2x1x16xf32>
    %165 = arith.subf %164, %7 : vector<2x1x16xf32>
    %166 = arith.mulf %165, %3 : vector<2x1x16xf32>
    %cst_77 = arith.constant 0.000000e+00 : f32
    %167 = vector.broadcast %cst_77 : f32 to vector<2x1x16xf32>
    %168 = arith.maximumf %166, %167 : vector<2x1x16xf32>
    %169 = arith.subf %11, %168 : vector<2x1x16xf32>
    %cst_78 = arith.constant 0.000000e+00 : f32
    %170 = vector.broadcast %cst_78 : f32 to vector<2x1x16xf32>
    %171 = arith.maximumf %169, %170 : vector<2x1x16xf32>
    %172 = arith.subf %15, %171 : vector<2x1x16xf32>
    %173 = arith.subf %164, %19 : vector<2x1x16xf32>
    %174 = arith.mulf %173, %3 : vector<2x1x16xf32>
    %cst_79 = arith.constant 0.000000e+00 : f32
    %175 = vector.broadcast %cst_79 : f32 to vector<2x1x16xf32>
    %176 = arith.maximumf %174, %175 : vector<2x1x16xf32>
    %177 = arith.subf %23, %176 : vector<2x1x16xf32>
    %cst_80 = arith.constant 0.000000e+00 : f32
    %178 = vector.broadcast %cst_80 : f32 to vector<2x1x16xf32>
    %179 = arith.maximumf %177, %178 : vector<2x1x16xf32>
    %180 = arith.subf %27, %179 : vector<2x1x16xf32>
    %c0_81 = arith.constant 0 : index
    %c3_82 = arith.constant 3 : index
    %c0_83 = arith.constant 0 : index
    %181 = vector.load %arg0[%c0_81, %c3_82, %c0_83] : memref<2x8x16xf32, #tpu.memory_space<vmem>>, vector<2x1x16xf32>
    %182 = arith.mulf %31, %181 : vector<2x1x16xf32>
    %183 = arith.mulf %35, %163 : vector<2x1x16xf32>
    %184 = arith.addf %182, %183 : vector<2x1x16xf32>
    %185 = arith.subf %184, %172 : vector<2x1x16xf32>
    %cst_84 = arith.constant 0.000000e+00 : f32
    %186 = vector.broadcast %cst_84 : f32 to vector<2x1x16xf32>
    %187 = arith.maximumf %185, %186 : vector<2x1x16xf32>
    %188 = arith.mulf %39, %187 : vector<2x1x16xf32>
    %189 = arith.addf %188, %180 : vector<2x1x16xf32>
    %190 = arith.subf %189, %172 : vector<2x1x16xf32>
    %cst_85 = arith.constant 0.000000e+00 : f32
    %191 = vector.broadcast %cst_85 : f32 to vector<2x1x16xf32>
    %192 = arith.maximumf %190, %191 : vector<2x1x16xf32>
    %193 = arith.mulf %43, %192 : vector<2x1x16xf32>
    %194 = arith.addf %193, %180 : vector<2x1x16xf32>
    %c0_86 = arith.constant 0 : index
    %c3_87 = arith.constant 3 : index
    %c0_88 = arith.constant 0 : index
    %195 = vector.load %arg3[%c0_86, %c3_87, %c0_88] : memref<2x8x16xf32, #tpu.memory_space<vmem>>, vector<2x1x16xf32>
    tpu.vector_store %arg3[%c0_86, %c3_87, %c0_88], %194 {strides = array<i32>} : memref<2x8x16xf32, #tpu.memory_space<vmem>>, vector<2x1x16xf32>,
    %c0_89 = arith.constant 0 : index
    %c3_90 = arith.constant 3 : index
    %c0_91 = arith.constant 0 : index
    %196 = vector.load %arg1[%c0_89, %c3_90, %c0_91] : memref<2x7x16xf32, #tpu.memory_space<vmem>>, vector<2x1x16xf32>
    %197 = arith.mulf %194, %196 : vector<2x1x16xf32>
    %198 = arith.addf %194, %197 : vector<2x1x16xf32>
    %199 = vector.extract_strided_slice %197 {offsets = [1, 0, 0], sizes = [1, 1, 16], strides = [1, 1, 1]} : vector<2x1x16xf32> to vector<1x1x16xf32>
    %200 = vector.extract_strided_slice %197 {offsets = [0, 0, 0], sizes = [1, 1, 16], strides = [1, 1, 1]} : vector<2x1x16xf32> to vector<1x1x16xf32>
    %201 = tpu.concatenate %199, %200 in 0 : vector<1x1x16xf32>, vector<1x1x16xf32> -> vector<2x1x16xf32>
    %202 = vector.extract_strided_slice %198 {offsets = [1, 0, 0], sizes = [1, 1, 16], strides = [1, 1, 1]} : vector<2x1x16xf32> to vector<1x1x16xf32>
    %203 = vector.extract_strided_slice %198 {offsets = [0, 0, 0], sizes = [1, 1, 16], strides = [1, 1, 1]} : vector<2x1x16xf32> to vector<1x1x16xf32>
    %204 = tpu.concatenate %202, %203 in 0 : vector<1x1x16xf32>, vector<1x1x16xf32> -> vector<2x1x16xf32>
    %205 = arith.addf %197, %201 : vector<2x1x16xf32>
    %cst_92 = arith.constant 1.000000e+00 : f32
    %206 = vector.broadcast %cst_92 : f32 to vector<2x1x16xf32>
    %207 = arith.addf %206, %205 : vector<2x1x16xf32>
    %208 = tpu.reciprocal %207 {approx = true} : vector<2x1x16xf32> -> vector<2x1x16xf32>
    %209 = arith.mulf %207, %208 : vector<2x1x16xf32>
    %cst_93 = arith.constant 2.000000e+00 : f32
    %210 = vector.broadcast %cst_93 : f32 to vector<2x1x16xf32>
    %211 = arith.subf %210, %209 : vector<2x1x16xf32>
    %212 = arith.mulf %208, %211 : vector<2x1x16xf32>
    %213 = arith.mulf %198, %212 : vector<2x1x16xf32>
    %214 = arith.mulf %204, %212 : vector<2x1x16xf32>
    %215 = arith.subf %214, %7 : vector<2x1x16xf32>
    %216 = arith.mulf %215, %3 : vector<2x1x16xf32>
    %cst_94 = arith.constant 0.000000e+00 : f32
    %217 = vector.broadcast %cst_94 : f32 to vector<2x1x16xf32>
    %218 = arith.maximumf %216, %217 : vector<2x1x16xf32>
    %219 = arith.subf %11, %218 : vector<2x1x16xf32>
    %cst_95 = arith.constant 0.000000e+00 : f32
    %220 = vector.broadcast %cst_95 : f32 to vector<2x1x16xf32>
    %221 = arith.maximumf %219, %220 : vector<2x1x16xf32>
    %222 = arith.subf %15, %221 : vector<2x1x16xf32>
    %223 = arith.subf %214, %19 : vector<2x1x16xf32>
    %224 = arith.mulf %223, %3 : vector<2x1x16xf32>
    %cst_96 = arith.constant 0.000000e+00 : f32
    %225 = vector.broadcast %cst_96 : f32 to vector<2x1x16xf32>
    %226 = arith.maximumf %224, %225 : vector<2x1x16xf32>
    %227 = arith.subf %23, %226 : vector<2x1x16xf32>
    %cst_97 = arith.constant 0.000000e+00 : f32
    %228 = vector.broadcast %cst_97 : f32 to vector<2x1x16xf32>
    %229 = arith.maximumf %227, %228 : vector<2x1x16xf32>
    %230 = arith.subf %27, %229 : vector<2x1x16xf32>
    %c0_98 = arith.constant 0 : index
    %c4_99 = arith.constant 4 : index
    %c0_100 = arith.constant 0 : index
    %231 = vector.load %arg0[%c0_98, %c4_99, %c0_100] : memref<2x8x16xf32, #tpu.memory_space<vmem>>, vector<2x1x16xf32>
    %232 = arith.mulf %31, %231 : vector<2x1x16xf32>
    %233 = arith.mulf %35, %213 : vector<2x1x16xf32>
    %234 = arith.addf %232, %233 : vector<2x1x16xf32>
    %235 = arith.subf %234, %222 : vector<2x1x16xf32>
    %cst_101 = arith.constant 0.000000e+00 : f32
    %236 = vector.broadcast %cst_101 : f32 to vector<2x1x16xf32>
    %237 = arith.maximumf %235, %236 : vector<2x1x16xf32>
    %238 = arith.mulf %39, %237 : vector<2x1x16xf32>
    %239 = arith.addf %238, %230 : vector<2x1x16xf32>
    %240 = arith.subf %239, %222 : vector<2x1x16xf32>
    %cst_102 = arith.constant 0.000000e+00 : f32
    %241 = vector.broadcast %cst_102 : f32 to vector<2x1x16xf32>
    %242 = arith.maximumf %240, %241 : vector<2x1x16xf32>
    %243 = arith.mulf %43, %242 : vector<2x1x16xf32>
    %244 = arith.addf %243, %230 : vector<2x1x16xf32>
    %c0_103 = arith.constant 0 : index
    %c4_104 = arith.constant 4 : index
    %c0_105 = arith.constant 0 : index
    %245 = vector.load %arg3[%c0_103, %c4_104, %c0_105] : memref<2x8x16xf32, #tpu.memory_space<vmem>>, vector<2x1x16xf32>
    tpu.vector_store %arg3[%c0_103, %c4_104, %c0_105], %244 {strides = array<i32>} : memref<2x8x16xf32, #tpu.memory_space<vmem>>, vector<2x1x16xf32>,
    %c0_106 = arith.constant 0 : index
    %c4_107 = arith.constant 4 : index
    %c0_108 = arith.constant 0 : index
    %246 = vector.load %arg1[%c0_106, %c4_107, %c0_108] : memref<2x7x16xf32, #tpu.memory_space<vmem>>, vector<2x1x16xf32>
    %247 = arith.mulf %244, %246 : vector<2x1x16xf32>
    %248 = arith.addf %244, %247 : vector<2x1x16xf32>
    %249 = vector.extract_strided_slice %247 {offsets = [1, 0, 0], sizes = [1, 1, 16], strides = [1, 1, 1]} : vector<2x1x16xf32> to vector<1x1x16xf32>
    %250 = vector.extract_strided_slice %247 {offsets = [0, 0, 0], sizes = [1, 1, 16], strides = [1, 1, 1]} : vector<2x1x16xf32> to vector<1x1x16xf32>
    %251 = tpu.concatenate %249, %250 in 0 : vector<1x1x16xf32>, vector<1x1x16xf32> -> vector<2x1x16xf32>
    %252 = vector.extract_strided_slice %248 {offsets = [1, 0, 0], sizes = [1, 1, 16], strides = [1, 1, 1]} : vector<2x1x16xf32> to vector<1x1x16xf32>
    %253 = vector.extract_strided_slice %248 {offsets = [0, 0, 0], sizes = [1, 1, 16], strides = [1, 1, 1]} : vector<2x1x16xf32> to vector<1x1x16xf32>
    %254 = tpu.concatenate %252, %253 in 0 : vector<1x1x16xf32>, vector<1x1x16xf32> -> vector<2x1x16xf32>
    %255 = arith.addf %247, %251 : vector<2x1x16xf32>
    %cst_109 = arith.constant 1.000000e+00 : f32
    %256 = vector.broadcast %cst_109 : f32 to vector<2x1x16xf32>
    %257 = arith.addf %256, %255 : vector<2x1x16xf32>
    %258 = tpu.reciprocal %257 {approx = true} : vector<2x1x16xf32> -> vector<2x1x16xf32>
    %259 = arith.mulf %257, %258 : vector<2x1x16xf32>
    %cst_110 = arith.constant 2.000000e+00 : f32
    %260 = vector.broadcast %cst_110 : f32 to vector<2x1x16xf32>
    %261 = arith.subf %260, %259 : vector<2x1x16xf32>
    %262 = arith.mulf %258, %261 : vector<2x1x16xf32>
    %263 = arith.mulf %248, %262 : vector<2x1x16xf32>
    %264 = arith.mulf %254, %262 : vector<2x1x16xf32>
    %265 = arith.subf %264, %7 : vector<2x1x16xf32>
    %266 = arith.mulf %265, %3 : vector<2x1x16xf32>
    %cst_111 = arith.constant 0.000000e+00 : f32
    %267 = vector.broadcast %cst_111 : f32 to vector<2x1x16xf32>
    %268 = arith.maximumf %266, %267 : vector<2x1x16xf32>
    %269 = arith.subf %11, %268 : vector<2x1x16xf32>
    %cst_112 = arith.constant 0.000000e+00 : f32
    %270 = vector.broadcast %cst_112 : f32 to vector<2x1x16xf32>
    %271 = arith.maximumf %269, %270 : vector<2x1x16xf32>
    %272 = arith.subf %15, %271 : vector<2x1x16xf32>
    %273 = arith.subf %264, %19 : vector<2x1x16xf32>
    %274 = arith.mulf %273, %3 : vector<2x1x16xf32>
    %cst_113 = arith.constant 0.000000e+00 : f32
    %275 = vector.broadcast %cst_113 : f32 to vector<2x1x16xf32>
    %276 = arith.maximumf %274, %275 : vector<2x1x16xf32>
    %277 = arith.subf %23, %276 : vector<2x1x16xf32>
    %cst_114 = arith.constant 0.000000e+00 : f32
    %278 = vector.broadcast %cst_114 : f32 to vector<2x1x16xf32>
    %279 = arith.maximumf %277, %278 : vector<2x1x16xf32>
    %280 = arith.subf %27, %279 : vector<2x1x16xf32>
    %c0_115 = arith.constant 0 : index
    %c5_116 = arith.constant 5 : index
    %c0_117 = arith.constant 0 : index
    %281 = vector.load %arg0[%c0_115, %c5_116, %c0_117] : memref<2x8x16xf32, #tpu.memory_space<vmem>>, vector<2x1x16xf32>
    %282 = arith.mulf %31, %281 : vector<2x1x16xf32>
    %283 = arith.mulf %35, %263 : vector<2x1x16xf32>
    %284 = arith.addf %282, %283 : vector<2x1x16xf32>
    %285 = arith.subf %284, %272 : vector<2x1x16xf32>
    %cst_118 = arith.constant 0.000000e+00 : f32
    %286 = vector.broadcast %cst_118 : f32 to vector<2x1x16xf32>
    %287 = arith.maximumf %285, %286 : vector<2x1x16xf32>
    %288 = arith.mulf %39, %287 : vector<2x1x16xf32>
    %289 = arith.addf %288, %280 : vector<2x1x16xf32>
    %290 = arith.subf %289, %272 : vector<2x1x16xf32>
    %cst_119 = arith.constant 0.000000e+00 : f32
    %291 = vector.broadcast %cst_119 : f32 to vector<2x1x16xf32>
    %292 = arith.maximumf %290, %291 : vector<2x1x16xf32>
    %293 = arith.mulf %43, %292 : vector<2x1x16xf32>
    %294 = arith.addf %293, %280 : vector<2x1x16xf32>
    %c0_120 = arith.constant 0 : index
    %c5_121 = arith.constant 5 : index
    %c0_122 = arith.constant 0 : index
    %295 = vector.load %arg3[%c0_120, %c5_121, %c0_122] : memref<2x8x16xf32, #tpu.memory_space<vmem>>, vector<2x1x16xf32>
    tpu.vector_store %arg3[%c0_120, %c5_121, %c0_122], %294 {strides = array<i32>} : memref<2x8x16xf32, #tpu.memory_space<vmem>>, vector<2x1x16xf32>,
    %c0_123 = arith.constant 0 : index
    %c5_124 = arith.constant 5 : index
    %c0_125 = arith.constant 0 : index
    %296 = vector.load %arg1[%c0_123, %c5_124, %c0_125] : memref<2x7x16xf32, #tpu.memory_space<vmem>>, vector<2x1x16xf32>
    %297 = arith.mulf %294, %296 : vector<2x1x16xf32>
    %298 = arith.addf %294, %297 : vector<2x1x16xf32>
    %299 = vector.extract_strided_slice %297 {offsets = [1, 0, 0], sizes = [1, 1, 16], strides = [1, 1, 1]} : vector<2x1x16xf32> to vector<1x1x16xf32>
    %300 = vector.extract_strided_slice %297 {offsets = [0, 0, 0], sizes = [1, 1, 16], strides = [1, 1, 1]} : vector<2x1x16xf32> to vector<1x1x16xf32>
    %301 = tpu.concatenate %299, %300 in 0 : vector<1x1x16xf32>, vector<1x1x16xf32> -> vector<2x1x16xf32>
    %302 = vector.extract_strided_slice %298 {offsets = [1, 0, 0], sizes = [1, 1, 16], strides = [1, 1, 1]} : vector<2x1x16xf32> to vector<1x1x16xf32>
    %303 = vector.extract_strided_slice %298 {offsets = [0, 0, 0], sizes = [1, 1, 16], strides = [1, 1, 1]} : vector<2x1x16xf32> to vector<1x1x16xf32>
    %304 = tpu.concatenate %302, %303 in 0 : vector<1x1x16xf32>, vector<1x1x16xf32> -> vector<2x1x16xf32>
    %305 = arith.addf %297, %301 : vector<2x1x16xf32>
    %cst_126 = arith.constant 1.000000e+00 : f32
    %306 = vector.broadcast %cst_126 : f32 to vector<2x1x16xf32>
    %307 = arith.addf %306, %305 : vector<2x1x16xf32>
    %308 = tpu.reciprocal %307 {approx = true} : vector<2x1x16xf32> -> vector<2x1x16xf32>
    %309 = arith.mulf %307, %308 : vector<2x1x16xf32>
    %cst_127 = arith.constant 2.000000e+00 : f32
    %310 = vector.broadcast %cst_127 : f32 to vector<2x1x16xf32>
    %311 = arith.subf %310, %309 : vector<2x1x16xf32>
    %312 = arith.mulf %308, %311 : vector<2x1x16xf32>
    %313 = arith.mulf %298, %312 : vector<2x1x16xf32>
    %314 = arith.mulf %304, %312 : vector<2x1x16xf32>
    %315 = arith.subf %314, %7 : vector<2x1x16xf32>
    %316 = arith.mulf %315, %3 : vector<2x1x16xf32>
    %cst_128 = arith.constant 0.000000e+00 : f32
    %317 = vector.broadcast %cst_128 : f32 to vector<2x1x16xf32>
    %318 = arith.maximumf %316, %317 : vector<2x1x16xf32>
    %319 = arith.subf %11, %318 : vector<2x1x16xf32>
    %cst_129 = arith.constant 0.000000e+00 : f32
    %320 = vector.broadcast %cst_129 : f32 to vector<2x1x16xf32>
    %321 = arith.maximumf %319, %320 : vector<2x1x16xf32>
    %322 = arith.subf %15, %321 : vector<2x1x16xf32>
    %323 = arith.subf %314, %19 : vector<2x1x16xf32>
    %324 = arith.mulf %323, %3 : vector<2x1x16xf32>
    %cst_130 = arith.constant 0.000000e+00 : f32
    %325 = vector.broadcast %cst_130 : f32 to vector<2x1x16xf32>
    %326 = arith.maximumf %324, %325 : vector<2x1x16xf32>
    %327 = arith.subf %23, %326 : vector<2x1x16xf32>
    %cst_131 = arith.constant 0.000000e+00 : f32
    %328 = vector.broadcast %cst_131 : f32 to vector<2x1x16xf32>
    %329 = arith.maximumf %327, %328 : vector<2x1x16xf32>
    %330 = arith.subf %27, %329 : vector<2x1x16xf32>
    %c0_132 = arith.constant 0 : index
    %c6_133 = arith.constant 6 : index
    %c0_134 = arith.constant 0 : index
    %331 = vector.load %arg0[%c0_132, %c6_133, %c0_134] : memref<2x8x16xf32, #tpu.memory_space<vmem>>, vector<2x1x16xf32>
    %332 = arith.mulf %31, %331 : vector<2x1x16xf32>
    %333 = arith.mulf %35, %313 : vector<2x1x16xf32>
    %334 = arith.addf %332, %333 : vector<2x1x16xf32>
    %335 = arith.subf %334, %322 : vector<2x1x16xf32>
    %cst_135 = arith.constant 0.000000e+00 : f32
    %336 = vector.broadcast %cst_135 : f32 to vector<2x1x16xf32>
    %337 = arith.maximumf %335, %336 : vector<2x1x16xf32>
    %338 = arith.mulf %39, %337 : vector<2x1x16xf32>
    %339 = arith.addf %338, %330 : vector<2x1x16xf32>
    %340 = arith.subf %339, %322 : vector<2x1x16xf32>
    %cst_136 = arith.constant 0.000000e+00 : f32
    %341 = vector.broadcast %cst_136 : f32 to vector<2x1x16xf32>
    %342 = arith.maximumf %340, %341 : vector<2x1x16xf32>
    %343 = arith.mulf %43, %342 : vector<2x1x16xf32>
    %344 = arith.addf %343, %330 : vector<2x1x16xf32>
    %c0_137 = arith.constant 0 : index
    %c6_138 = arith.constant 6 : index
    %c0_139 = arith.constant 0 : index
    %345 = vector.load %arg3[%c0_137, %c6_138, %c0_139] : memref<2x8x16xf32, #tpu.memory_space<vmem>>, vector<2x1x16xf32>
    tpu.vector_store %arg3[%c0_137, %c6_138, %c0_139], %344 {strides = array<i32>} : memref<2x8x16xf32, #tpu.memory_space<vmem>>, vector<2x1x16xf32>,
    %c0_140 = arith.constant 0 : index
    %c6_141 = arith.constant 6 : index
    %c0_142 = arith.constant 0 : index
    %346 = vector.load %arg1[%c0_140, %c6_141, %c0_142] : memref<2x7x16xf32, #tpu.memory_space<vmem>>, vector<2x1x16xf32>
    %347 = arith.mulf %344, %346 : vector<2x1x16xf32>
    %348 = arith.addf %344, %347 : vector<2x1x16xf32>
    %349 = vector.extract_strided_slice %347 {offsets = [1, 0, 0], sizes = [1, 1, 16], strides = [1, 1, 1]} : vector<2x1x16xf32> to vector<1x1x16xf32>
    %350 = vector.extract_strided_slice %347 {offsets = [0, 0, 0], sizes = [1, 1, 16], strides = [1, 1, 1]} : vector<2x1x16xf32> to vector<1x1x16xf32>
    %351 = tpu.concatenate %349, %350 in 0 : vector<1x1x16xf32>, vector<1x1x16xf32> -> vector<2x1x16xf32>
    %352 = vector.extract_strided_slice %348 {offsets = [1, 0, 0], sizes = [1, 1, 16], strides = [1, 1, 1]} : vector<2x1x16xf32> to vector<1x1x16xf32>
    %353 = vector.extract_strided_slice %348 {offsets = [0, 0, 0], sizes = [1, 1, 16], strides = [1, 1, 1]} : vector<2x1x16xf32> to vector<1x1x16xf32>
    %354 = tpu.concatenate %352, %353 in 0 : vector<1x1x16xf32>, vector<1x1x16xf32> -> vector<2x1x16xf32>
    %355 = arith.addf %347, %351 : vector<2x1x16xf32>
    %cst_143 = arith.constant 1.000000e+00 : f32
    %356 = vector.broadcast %cst_143 : f32 to vector<2x1x16xf32>
    %357 = arith.addf %356, %355 : vector<2x1x16xf32>
    %358 = tpu.reciprocal %357 {approx = true} : vector<2x1x16xf32> -> vector<2x1x16xf32>
    %359 = arith.mulf %357, %358 : vector<2x1x16xf32>
    %cst_144 = arith.constant 2.000000e+00 : f32
    %360 = vector.broadcast %cst_144 : f32 to vector<2x1x16xf32>
    %361 = arith.subf %360, %359 : vector<2x1x16xf32>
    %362 = arith.mulf %358, %361 : vector<2x1x16xf32>
    %363 = arith.mulf %348, %362 : vector<2x1x16xf32>
    %364 = arith.mulf %354, %362 : vector<2x1x16xf32>
    %365 = arith.subf %364, %7 : vector<2x1x16xf32>
    %366 = arith.mulf %365, %3 : vector<2x1x16xf32>
    %cst_145 = arith.constant 0.000000e+00 : f32
    %367 = vector.broadcast %cst_145 : f32 to vector<2x1x16xf32>
    %368 = arith.maximumf %366, %367 : vector<2x1x16xf32>
    %369 = arith.subf %11, %368 : vector<2x1x16xf32>
    %cst_146 = arith.constant 0.000000e+00 : f32
    %370 = vector.broadcast %cst_146 : f32 to vector<2x1x16xf32>
    %371 = arith.maximumf %369, %370 : vector<2x1x16xf32>
    %372 = arith.subf %15, %371 : vector<2x1x16xf32>
    %373 = arith.subf %364, %19 : vector<2x1x16xf32>
    %374 = arith.mulf %373, %3 : vector<2x1x16xf32>
    %cst_147 = arith.constant 0.000000e+00 : f32
    %375 = vector.broadcast %cst_147 : f32 to vector<2x1x16xf32>
    %376 = arith.maximumf %374, %375 : vector<2x1x16xf32>
    %377 = arith.subf %23, %376 : vector<2x1x16xf32>
    %cst_148 = arith.constant 0.000000e+00 : f32
    %378 = vector.broadcast %cst_148 : f32 to vector<2x1x16xf32>
    %379 = arith.maximumf %377, %378 : vector<2x1x16xf32>
    %380 = arith.subf %27, %379 : vector<2x1x16xf32>
    %c0_149 = arith.constant 0 : index
    %c7_150 = arith.constant 7 : index
    %c0_151 = arith.constant 0 : index
    %381 = vector.load %arg0[%c0_149, %c7_150, %c0_151] : memref<2x8x16xf32, #tpu.memory_space<vmem>>, vector<2x1x16xf32>
    %382 = arith.mulf %31, %381 : vector<2x1x16xf32>
    %383 = arith.mulf %35, %363 : vector<2x1x16xf32>
    %384 = arith.addf %382, %383 : vector<2x1x16xf32>
    %385 = arith.subf %384, %372 : vector<2x1x16xf32>
    %cst_152 = arith.constant 0.000000e+00 : f32
    %386 = vector.broadcast %cst_152 : f32 to vector<2x1x16xf32>
    %387 = arith.maximumf %385, %386 : vector<2x1x16xf32>
    %388 = arith.mulf %39, %387 : vector<2x1x16xf32>
    %389 = arith.addf %388, %380 : vector<2x1x16xf32>
    %390 = arith.subf %389, %372 : vector<2x1x16xf32>
    %cst_153 = arith.constant 0.000000e+00 : f32
    %391 = vector.broadcast %cst_153 : f32 to vector<2x1x16xf32>
    %392 = arith.maximumf %390, %391 : vector<2x1x16xf32>
    %393 = arith.mulf %43, %392 : vector<2x1x16xf32>
    %394 = arith.addf %393, %380 : vector<2x1x16xf32>
    %c0_154 = arith.constant 0 : index
    %c7_155 = arith.constant 7 : index
    %c0_156 = arith.constant 0 : index
    %395 = vector.load %arg3[%c0_154, %c7_155, %c0_156] : memref<2x8x16xf32, #tpu.memory_space<vmem>>, vector<2x1x16xf32>
    tpu.vector_store %arg3[%c0_154, %c7_155, %c0_156], %394 {strides = array<i32>} : memref<2x8x16xf32, #tpu.memory_space<vmem>>, vector<2x1x16xf32>,
    return
  }
}

</mosaic_0001>

<bundles_post_ra>
// kernel: notrade_region_rnn.1
= control target key start
LH: loop header
LB: loop body
LE: loop exit
PB: predicated region body
PF: predicated region fallthrough
CT: control target
= control target key end

     0   :  { %v738_v0 = vmov 0   ;;  %vm246_vm0 = vcmask 122880   ;;  %v21_v39 = vlaneseq  ;;  %s1255_s2 = inlined_call_operand.vmem [shape: f32[11,2,1,1], index: 2, kind: input, shape index: {}]   ;;  %s1256_s0 = inlined_call_operand.vmem [shape: f32[2,8,16], index: 0, kind: input, shape index: {}]   ;;  %s1257_s1 = inlined_call_operand.vmem [shape: f32[2,7,16], index: 1, kind: input, shape index: {}]   ;;  %s1258_s3 = inlined_call_operand.vmem [shape: f32[2,8,16], index: 3, kind: output, shape index: {}]  }
   0x1   :  { %723 = vset.pattern.permute.xlu1 %v738_v0  ;;  %722 = vset.pattern.permute.xlu0 %v738_v0  ;;  %v701_v1 = vld [vmem:[%s1255_s2 + $0x2] sm:$0x1]  ;;  %v14_v2 = vld [vmem:[%s1255_s2] sm:$0x1]  ;;  %v702_v3 = vld [vmem:[%s1255_s2 + $0x3] sm:$0x1] }
   0x2   :  { %39 = vperm.xlu0 %722, %v701_v1   ;;  %18 = vperm.xlu1 %723, %v14_v2   ;;  %v15_v4 = vld [vmem:[%s1255_s2 + $0x1] sm:$0x1]  ;;  %v703_v5 = vld [vmem:[%s1255_s2 + $0x4] sm:$0x1]  ;;  %v704_v6 = vld [vmem:[%s1255_s2 + $0x5] sm:$0x1] }
   0x3   :  { %v244_v7 = vld [vmem:[%s1256_s0] sm:$0x1]  ;;  %v245_v8 = vld [vmem:[%s1256_s0 + $0x8] sm:$0x1]  ;;  %v708_v14 = vld [vmem:[%s1255_s2 + $0x9] sm:$0x1] }
   0x4   :  { %v249_v9 = vld [vmem:[%s1257_s1] sm:$0x1]  ;;  %v250_v10 = vld [vmem:[%s1257_s1 + $0x8] sm:$0x1]  ;;  %v713_v17 = vld [vmem:[%s1255_s2 + $0xe] sm:$0x1] }
   0x5   :  { %v251_v11 = vmul.f32 %v249_v9, %v244_v7  ;;  %v252_v12 = vmul.f32 %v250_v10, %v245_v8  ;;  %v707_v13 = vld [vmem:[%s1255_s2 + $0x8] sm:$0x1]  ;;  %v714_v18 = vld [vmem:[%s1255_s2 + $0xf] sm:$0x1]  ;;  %v715_v19 = vld [vmem:[%s1255_s2 + $0x10] sm:$0x1] }
   0x6   :  { %48 = vperm.xlu0 %722, %v702_v3   ;;  %27 = vperm.xlu1 %723, %v15_v4   ;;  %v716_v20 = vld [vmem:[%s1255_s2 + $0x11] sm:$0x1]  ;;  %v705_v21 = vld [vmem:[%s1255_s2 + $0x6] sm:$0x1]  ;;  %v706_v22 = vld [vmem:[%s1255_s2 + $0x7] sm:$0x1] }
   0x7   :  { %v255_v15 = vadd.f32 %v252_v12, %v251_v11  ;;  %v709_v23 = vld [vmem:[%s1255_s2 + $0xa] sm:$0x1]  ;;  %v710_v24 = vld [vmem:[%s1255_s2 + $0xb] sm:$0x1]  ;;  %v711_v27 = vld [vmem:[%s1255_s2 + $0xc] sm:$0x1]  ;;  %v254_v29 = vadd.f32 %v252_v12, %v245_v8  ;;  %v253_v31 = vadd.f32 %v251_v11, %v244_v7 }
   0x8   :  { %v712_v28 = vld [vmem:[%s1255_s2 + $0xd] sm:$0x1]  ;;  %v717_v33 = vld [vmem:[%s1255_s2 + $0x12] sm:$0x1]  ;;  %v718_v34 = vld [vmem:[%s1255_s2 + $0x13] sm:$0x1] }
   0x9   :  { %v256_v16 = vadd.f32 1.0, %v255_v15  ;;  %v719_v37 = vld [vmem:[%s1255_s2 + $0x14] sm:$0x1]  ;;  %v720_v38 = vld [vmem:[%s1255_s2 + $0x15] sm:$0x1]  ;;  %v22_v40 = vshrl.u32 %v21_v39, 7 }
   0xa   :  { %60 = vperm.xlu0 %722, %v703_v5   ;;  %69 = vperm.xlu1 %723, %v704_v6   ;;  %247 = vst.msk [vmem:[%s1258_s3] sm:$0x1] %vm246_vm0, %v244_v7  ;;  %248 = vst.msk [vmem:[%s1258_s3 + $0x8] sm:$0x1] %vm246_vm0, %v245_v8  ;;  %v415_v60 = vld [vmem:[%s1256_s0 + $0x3] sm:$0x1] }
   0xb   :  { %724 = vrcp.f32 %v256_v16  ;;  %v849_v43 = vsub.s32 0, %v22_v40  ;;  %v479_v63 = vld [vmem:[%s1256_s0 + $0x4] sm:$0x1]  ;;  %v543_v0 = vld [vmem:[%s1256_s0 + $0x5] sm:$0x1] }
   0xc   :  { %v607_v1 = vld [vmem:[%s1256_s0 + $0x6] sm:$0x1]  ;;  %v671_v5 = vld [vmem:[%s1256_s0 + $0x7] sm:$0x1]  ;;  %v416_v7 = vld [vmem:[%s1256_s0 + $0xb] sm:$0x1] }
   0xd   :  { %v480_v10 = vld [vmem:[%s1256_s0 + $0xc] sm:$0x1]  ;;  %v544_v11 = vld [vmem:[%s1256_s0 + $0xd] sm:$0x1] }
   0xe   :  { %102 = vperm.xlu0 %722, %v707_v13   ;;  %111 = vperm.xlu1 %723, %v708_v14  }
  0x12   :  { %165 = vperm.xlu0 %722, %v713_v17   ;;  %174 = vperm.xlu1 %723, %v714_v18   ;;  %v672_v17 = vld [vmem:[%s1256_s0 + $0xf] sm:$0x1] }
  0x16   :  { %186 = vperm.xlu0 %722, %v715_v19   ;;  %195 = vperm.xlu1 %723, %v716_v20  }
  0x18   :  { %v725_v25 = vpop.eup %724 }
  0x19   :  { %v258_v26 = vmul.f32 %v725_v25, %v256_v16  ;;  %v608_v16 = vld [vmem:[%s1256_s0 + $0xe] sm:$0x1] }
  0x1a   :  { %81 = vperm.xlu0 %722, %v705_v21   ;;  %90 = vperm.xlu1 %723, %v706_v22  }
  0x1b   :  { %v259_v30 = vsub.f32 2.0, %v258_v26  ;;  %v288_v26 = vld [vmem:[%s1256_s0 + $0x9] sm:$0x1] }
  0x1d   :  { %v260_v32 = vmul.f32 %v725_v25, %v259_v30  ;;  %v287_v25 = vld [vmem:[%s1256_s0 + $0x1] sm:$0x1] }
  0x1e   :  { %123 = vperm.xlu0 %722, %v709_v23   ;;  %132 = vperm.xlu1 %723, %v710_v24  }
  0x1f   :  { %v831_v35 = vmul.f32 %v260_v32, %v254_v29  ;;  %v833_v36 = vmul.f32 %v260_v32, %v253_v31 }
  0x22   :  { %144 = vperm.xlu0 %722, %v711_v27   ;;  %153 = vperm.xlu1 %723, %v712_v28  }
  0x26   :  { %207 = vperm.xlu0 %722, %v717_v33   ;;  %216 = vperm.xlu1 %723, %v718_v34  }
  0x2a   :  { %228 = vperm.xlu0 %722, %v719_v37   ;;  %237 = vperm.xlu1 %723, %v720_v38  }
  0x7d   :  { %v40_v41 = vpop.permute.xlu0 %39  ;;  %v19_v42 = vpop.permute.xlu1 %18 }
  0x7e   :  { %v855_v47 = vrot.slane %v40_v41, %v849_v43  ;;  %v865_v53 = vrot.slane %v19_v42, %v849_v43 }
  0x80   :  { %v263_v51 = vsub.f32 %v831_v35, %v855_v47 }
  0x81   :  { %v49_v44 = vpop.permute.xlu0 %48  ;;  %v28_v45 = vpop.permute.xlu1 %27 }
  0x82   :  { %v852_v46 = vrot.slane %v49_v44, %v849_v43  ;;  %v862_v52 = vrot.slane %v28_v45, %v849_v43  ;;  %v265_v57 = vmul.f32 %v263_v51, %v865_v53 }
  0x84   :  { %v264_v50 = vsub.f32 %v833_v36, %v852_v46  ;;  %v267_v8 = vmax.f32 %v265_v57, 0.0 }
  0x85   :  { %v61_v48 = vpop.permute.xlu0 %60  ;;  %v70_v49 = vpop.permute.xlu1 %69 }
  0x86   :  { %v266_v56 = vmul.f32 %v264_v50, %v862_v52  ;;  %v879_v61 = vrot.slane %v61_v48, %v849_v43  ;;  %v903_v9 = vrot.slane %v70_v49, %v849_v43 }
  0x88   :  { %v268_v3 = vmax.f32 %v266_v56, 0.0  ;;  %v269_v18 = vsub.f32 %v879_v61, %v267_v8 }
  0x89   :  { %v103_v54 = vpop.permute.xlu0 %102  ;;  %v112_v55 = vpop.permute.xlu1 %111 }
  0x8a   :  { %v870_v58 = vrot.slane %v103_v54, %v849_v43  ;;  %v873_v59 = vrot.slane %v112_v55, %v849_v43  ;;  %v270_v24 = vsub.f32 %v903_v9, %v268_v3  ;;  %v271_v45 = vmax.f32 %v269_v18, 0.0 }
  0x8c   :  { %v275_v12 = vsub.f32 %v831_v35, %v870_v58  ;;  %v276_v13 = vsub.f32 %v833_v36, %v873_v59  ;;  %v272_v48 = vmax.f32 %v270_v24, 0.0 }
  0x8d   :  { %v166_v62 = vpop.permute.xlu0 %165  ;;  %v175_v2 = vpop.permute.xlu1 %174 }
  0x8e   :  { %v891_v4 = vrot.slane %v166_v62, %v849_v43  ;;  %v897_v6 = vrot.slane %v175_v2, %v849_v43  ;;  %v277_v34 = vmul.f32 %v275_v12, %v865_v53  ;;  %v278_v37 = vmul.f32 %v276_v13, %v862_v52 }
  0x90   :  { %v916_v14 = vmul.f32 %v415_v60, %v891_v4  ;;  %v919_v15 = vmul.f32 %v479_v63, %v891_v4  ;;  %v929_v19 = vmul.f32 %v543_v0, %v891_v4  ;;  %v932_v20 = vmul.f32 %v607_v1, %v891_v4 }
  0x91   :  { %v935_v21 = vmul.f32 %v671_v5, %v891_v4  ;;  %v187_v22 = vpop.permute.xlu0 %186  ;;  %v196_v23 = vpop.permute.xlu1 %195  ;;  %v945_v27 = vmul.f32 %v416_v7, %v897_v6  ;;  %v948_v28 = vmul.f32 %v480_v10, %v897_v6  ;;  %v951_v29 = vmul.f32 %v544_v11, %v897_v6 }
  0x92   :  { %v954_v30 = vmul.f32 %v608_v16, %v897_v6  ;;  %v957_v31 = vmul.f32 %v672_v17, %v897_v6  ;;  %v960_v32 = vrot.slane %v187_v22, %v849_v43  ;;  %v963_v33 = vrot.slane %v196_v23, %v849_v43 }
  0x93   :  { %v289_v38 = vmul.f32 %v287_v25, %v891_v4  ;;  %v290_v39 = vmul.f32 %v288_v26, %v897_v6  ;;  %v279_v57 = vmax.f32 %v277_v34, 0.0 }
  0x94   :  { %v291_v40 = vmul.f32 %v833_v36, %v960_v32  ;;  %v292_v41 = vmul.f32 %v831_v35, %v963_v33  ;;  %v280_v35 = vmax.f32 %v278_v37, 0.0 }
  0x95   :  { %v82_v42 = vpop.permute.xlu0 %81  ;;  %v91_v44 = vpop.permute.xlu1 %90 }
  0x96   :  { %v974_v49 = vrot.slane %v82_v42, %v849_v43  ;;  %v977_v50 = vrot.slane %v91_v44, %v849_v43  ;;  %v293_v51 = vadd.f32 %v291_v40, %v289_v38  ;;  %v294_v54 = vadd.f32 %v292_v41, %v290_v39 }
  0x98   :  { %v273_v55 = vsub.f32 %v974_v49, %v271_v45  ;;  %v274_v56 = vsub.f32 %v977_v50, %v272_v48 }
  0x99   :  { %v124_v36 = vpop.permute.xlu0 %123  ;;  %v133_v60 = vpop.permute.xlu1 %132 }
  0x9a   :  { %v295_v62 = vsub.f32 %v293_v51, %v273_v55  ;;  %v296_v63 = vsub.f32 %v294_v54, %v274_v56  ;;  %v982_v0 = vrot.slane %v124_v36, %v849_v43  ;;  %v985_v1 = vrot.slane %v133_v60, %v849_v43 }
  0x9c   :  { %v281_v2 = vsub.f32 %v982_v0, %v279_v57  ;;  %v282_v3 = vsub.f32 %v985_v1, %v280_v35  ;;  %v297_v18 = vmax.f32 %v295_v62, 0.0  ;;  %v298_v23 = vmax.f32 %v296_v63, 0.0  ;;  %v313_v57 = vld [vmem:[%s1257_s1 + $0x1] sm:$0x1] }
  0x9d   :  { %v145_v5 = vpop.permute.xlu0 %144  ;;  %v154_v7 = vpop.permute.xlu1 %153 }
  0x9e   :  { %v283_v8 = vmax.f32 %v281_v2, 0.0  ;;  %v284_v10 = vmax.f32 %v282_v3, 0.0  ;;  %v990_v11 = vrot.slane %v145_v5, %v849_v43  ;;  %v993_v12 = vrot.slane %v154_v7, %v849_v43 }
  0xa0   :  { %v285_v24 = vsub.f32 %v990_v11, %v283_v8  ;;  %v286_v25 = vsub.f32 %v993_v12, %v284_v10 }
  0xa1   :  { %v208_v13 = vpop.permute.xlu0 %207  ;;  %v217_v16 = vpop.permute.xlu1 %216 }
  0xa2   :  { %v996_v17 = vrot.slane %v208_v13, %v849_v43  ;;  %v999_v22 = vrot.slane %v217_v16, %v849_v43  ;;  %v351_v13 = vld [vmem:[%s1256_s0 + $0x2] sm:$0x1]  ;;  %v352_v16 = vld [vmem:[%s1256_s0 + $0xa] sm:$0x1] }
  0xa4   :  { %v299_v26 = vmul.f32 %v297_v18, %v996_v17  ;;  %v300_v34 = vmul.f32 %v298_v23, %v999_v22 }
  0xa5   :  { %v229_v39 = vpop.permute.xlu0 %228  ;;  %v238_v40 = vpop.permute.xlu1 %237 }
  0xa6   :  { %v301_v37 = vadd.f32 %v299_v26, %v285_v24  ;;  %v302_v38 = vadd.f32 %v300_v34, %v286_v25  ;;  %v1006_v44 = vrot.slane %v229_v39, %v849_v43  ;;  %v1009_v48 = vrot.slane %v238_v40, %v849_v43 }
  0xa8   :  { %v303_v41 = vsub.f32 %v301_v37, %v273_v55  ;;  %v304_v42 = vsub.f32 %v302_v38, %v274_v56  ;;  %v314_v55 = vld [vmem:[%s1257_s1 + $0x9] sm:$0x1]  ;;  %v353_v37 = vmul.f32 %v351_v13, %v891_v4  ;;  %v354_v38 = vmul.f32 %v352_v16, %v897_v6 }
  0xaa   :  { %v305_v45 = vmax.f32 %v303_v41, 0.0  ;;  %v306_v51 = vmax.f32 %v304_v42, 0.0 }
  0xac   :  { %v307_v54 = vmul.f32 %v305_v45, %v1006_v44  ;;  %v308_v36 = vmul.f32 %v306_v51, %v1009_v48 }
  0xae   :  { %v309_v56 = vadd.f32 %v307_v54, %v285_v24  ;;  %v310_v60 = vadd.f32 %v308_v36, %v286_v25 }
  0xb0   :  { %311 = vst.msk [vmem:[%s1258_s3 + $0x1] sm:$0x1] %vm246_vm0, %v309_v56  ;;  %v315_v43 = vmul.f32 %v313_v57, %v309_v56  ;;  %312 = vst.msk [vmem:[%s1258_s3 + $0x9] sm:$0x1] %vm246_vm0, %v310_v60  ;;  %v316_v35 = vmul.f32 %v314_v55, %v310_v60 }
  0xb2   :  { %v319_v62 = vadd.f32 %v316_v35, %v315_v43  ;;  %v317_v7 = vadd.f32 %v315_v43, %v309_v56  ;;  %v318_v8 = vadd.f32 %v316_v35, %v310_v60 }
  0xb4   :  { %v320_v63 = vadd.f32 1.0, %v319_v62 }
  0xb6   :  { %726 = vrcp.f32 %v320_v63 }
  0xc3   :  { %v727_v2 = vpop.eup %726 }
  0xc4   :  { %v322_v3 = vmul.f32 %v727_v2, %v320_v63 }
  0xc6   :  { %v323_v5 = vsub.f32 2.0, %v322_v3 }
  0xc8   :  { %v324_v10 = vmul.f32 %v727_v2, %v323_v5 }
  0xca   :  { %v325_v18 = vmul.f32 %v324_v10, %v317_v7  ;;  %v326_v23 = vmul.f32 %v324_v10, %v318_v8 }
  0xcc   :  { %v327_v24 = vsub.f32 %v326_v23, %v855_v47  ;;  %v328_v25 = vsub.f32 %v325_v18, %v852_v46  ;;  %v339_v26 = vsub.f32 %v326_v23, %v870_v58  ;;  %v340_v34 = vsub.f32 %v325_v18, %v873_v59 }
  0xcd   :  { %v355_v39 = vmul.f32 %v325_v18, %v960_v32  ;;  %v356_v40 = vmul.f32 %v326_v23, %v963_v33 }
  0xce   :  { %v329_v41 = vmul.f32 %v327_v24, %v865_v53  ;;  %v330_v42 = vmul.f32 %v328_v25, %v862_v52  ;;  %v341_v45 = vmul.f32 %v339_v26, %v865_v53  ;;  %v342_v51 = vmul.f32 %v340_v34, %v862_v52 }
  0xcf   :  { %v357_v54 = vadd.f32 %v355_v39, %v353_v37  ;;  %v358_v36 = vadd.f32 %v356_v40, %v354_v38 }
  0xd0   :  { %v331_v57 = vmax.f32 %v329_v41, 0.0  ;;  %v332_v55 = vmax.f32 %v330_v42, 0.0  ;;  %v343_v56 = vmax.f32 %v341_v45, 0.0  ;;  %v344_v4 = vmax.f32 %v342_v51, 0.0  ;;  %v377_v45 = vld [vmem:[%s1257_s1 + $0x2] sm:$0x1] }
  0xd1   :  { %v378_v51 = vld [vmem:[%s1257_s1 + $0xa] sm:$0x1] }
  0xd2   :  { %v333_v6 = vsub.f32 %v879_v61, %v331_v57  ;;  %v334_v60 = vsub.f32 %v903_v9, %v332_v55  ;;  %v345_v62 = vsub.f32 %v982_v0, %v343_v56  ;;  %v346_v63 = vsub.f32 %v985_v1, %v344_v4 }
  0xd4   :  { %v335_v43 = vmax.f32 %v333_v6, 0.0  ;;  %v336_v35 = vmax.f32 %v334_v60, 0.0  ;;  %v347_v5 = vmax.f32 %v345_v62, 0.0  ;;  %v348_v7 = vmax.f32 %v346_v63, 0.0 }
  0xd6   :  { %v337_v2 = vsub.f32 %v974_v49, %v335_v43  ;;  %v338_v3 = vsub.f32 %v977_v50, %v336_v35  ;;  %v349_v18 = vsub.f32 %v990_v11, %v347_v5  ;;  %v350_v23 = vsub.f32 %v993_v12, %v348_v7 }
  0xd8   :  { %v359_v8 = vsub.f32 %v357_v54, %v337_v2  ;;  %v360_v10 = vsub.f32 %v358_v36, %v338_v3 }
  0xda   :  { %v361_v13 = vmax.f32 %v359_v8, 0.0  ;;  %v362_v16 = vmax.f32 %v360_v10, 0.0 }
  0xdc   :  { %v363_v24 = vmul.f32 %v361_v13, %v996_v17  ;;  %v364_v25 = vmul.f32 %v362_v16, %v999_v22 }
  0xde   :  { %v365_v26 = vadd.f32 %v363_v24, %v349_v18  ;;  %v366_v34 = vadd.f32 %v364_v25, %v350_v23 }
  0xe0   :  { %v367_v37 = vsub.f32 %v365_v26, %v337_v2  ;;  %v368_v38 = vsub.f32 %v366_v34, %v338_v3 }
  0xe2   :  { %v369_v39 = vmax.f32 %v367_v37, 0.0  ;;  %v370_v40 = vmax.f32 %v368_v38, 0.0 }
  0xe4   :  { %v371_v41 = vmul.f32 %v369_v39, %v1006_v44  ;;  %v372_v42 = vmul.f32 %v370_v40, %v1009_v48 }
  0xe6   :  { %v373_v54 = vadd.f32 %v371_v41, %v349_v18  ;;  %v374_v36 = vadd.f32 %v372_v42, %v350_v23 }
  0xe8   :  { %375 = vst.msk [vmem:[%s1258_s3 + $0x2] sm:$0x1] %vm246_vm0, %v373_v54  ;;  %376 = vst.msk [vmem:[%s1258_s3 + $0xa] sm:$0x1] %vm246_vm0, %v374_v36  ;;  %v379_v57 = vmul.f32 %v377_v45, %v373_v54  ;;  %v380_v55 = vmul.f32 %v378_v51, %v374_v36 }
  0xea   :  { %v383_v56 = vadd.f32 %v380_v55, %v379_v57  ;;  %v381_v35 = vadd.f32 %v379_v57, %v373_v54  ;;  %v382_v62 = vadd.f32 %v380_v55, %v374_v36 }
  0xec   :  { %v384_v4 = vadd.f32 1.0, %v383_v56 }
  0xee   :  { %728 = vrcp.f32 %v384_v4 }
  0xfb   :  { %v729_v6 = vpop.eup %728 }
  0xfc   :  { %v386_v60 = vmul.f32 %v729_v6, %v384_v4 }
  0xfe   :  { %v387_v43 = vsub.f32 2.0, %v386_v60 }
 0x100   :  { %v388_v63 = vmul.f32 %v729_v6, %v387_v43 }
 0x102   :  { %v389_v2 = vmul.f32 %v388_v63, %v381_v35  ;;  %v390_v3 = vmul.f32 %v388_v63, %v382_v62 }
 0x104   :  { %v391_v5 = vsub.f32 %v390_v3, %v855_v47  ;;  %v392_v7 = vsub.f32 %v389_v2, %v852_v46  ;;  %v403_v8 = vsub.f32 %v390_v3, %v870_v58  ;;  %v404_v10 = vsub.f32 %v389_v2, %v873_v59 }
 0x105   :  { %v419_v13 = vmul.f32 %v389_v2, %v960_v32  ;;  %v420_v16 = vmul.f32 %v390_v3, %v963_v33 }
 0x106   :  { %v393_v18 = vmul.f32 %v391_v5, %v865_v53  ;;  %v394_v23 = vmul.f32 %v392_v7, %v862_v52  ;;  %v405_v24 = vmul.f32 %v403_v8, %v865_v53  ;;  %v406_v25 = vmul.f32 %v404_v10, %v862_v52 }
 0x107   :  { %v421_v26 = vadd.f32 %v419_v13, %v916_v14  ;;  %v422_v34 = vadd.f32 %v420_v16, %v945_v27 }
 0x108   :  { %v395_v37 = vmax.f32 %v393_v18, 0.0  ;;  %v396_v38 = vmax.f32 %v394_v23, 0.0  ;;  %v407_v39 = vmax.f32 %v405_v24, 0.0  ;;  %v408_v40 = vmax.f32 %v406_v25, 0.0  ;;  %v441_v18 = vld [vmem:[%s1257_s1 + $0x3] sm:$0x1] }
 0x109   :  { %v442_v23 = vld [vmem:[%s1257_s1 + $0xb] sm:$0x1] }
 0x10a   :  { %v397_v41 = vsub.f32 %v879_v61, %v395_v37  ;;  %v398_v42 = vsub.f32 %v903_v9, %v396_v38  ;;  %v409_v54 = vsub.f32 %v982_v0, %v407_v39  ;;  %v410_v36 = vsub.f32 %v985_v1, %v408_v40 }
 0x10c   :  { %v399_v45 = vmax.f32 %v397_v41, 0.0  ;;  %v400_v51 = vmax.f32 %v398_v42, 0.0  ;;  %v411_v55 = vmax.f32 %v409_v54, 0.0  ;;  %v412_v27 = vmax.f32 %v410_v36, 0.0 }
 0x10e   :  { %v401_v57 = vsub.f32 %v974_v49, %v399_v45  ;;  %v402_v14 = vsub.f32 %v977_v50, %v400_v51  ;;  %v413_v43 = vsub.f32 %v990_v11, %v411_v55  ;;  %v414_v35 = vsub.f32 %v993_v12, %v412_v27 }
 0x110   :  { %v423_v56 = vsub.f32 %v421_v26, %v401_v57  ;;  %v424_v4 = vsub.f32 %v422_v34, %v402_v14 }
 0x112   :  { %v425_v6 = vmax.f32 %v423_v56, 0.0  ;;  %v426_v60 = vmax.f32 %v424_v4, 0.0 }
 0x114   :  { %v427_v62 = vmul.f32 %v425_v6, %v996_v17  ;;  %v428_v63 = vmul.f32 %v426_v60, %v999_v22 }
 0x116   :  { %v429_v2 = vadd.f32 %v427_v62, %v413_v43  ;;  %v430_v3 = vadd.f32 %v428_v63, %v414_v35 }
 0x118   :  { %v431_v5 = vsub.f32 %v429_v2, %v401_v57  ;;  %v432_v7 = vsub.f32 %v430_v3, %v402_v14 }
 0x11a   :  { %v433_v8 = vmax.f32 %v431_v5, 0.0  ;;  %v434_v10 = vmax.f32 %v432_v7, 0.0 }
 0x11c   :  { %v435_v13 = vmul.f32 %v433_v8, %v1006_v44  ;;  %v436_v16 = vmul.f32 %v434_v10, %v1009_v48 }
 0x11e   :  { %v437_v24 = vadd.f32 %v435_v13, %v413_v43  ;;  %v438_v25 = vadd.f32 %v436_v16, %v414_v35 }
 0x120   :  { %439 = vst.msk [vmem:[%s1258_s3 + $0x3] sm:$0x1] %vm246_vm0, %v437_v24  ;;  %440 = vst.msk [vmem:[%s1258_s3 + $0xb] sm:$0x1] %vm246_vm0, %v438_v25  ;;  %v443_v26 = vmul.f32 %v441_v18, %v437_v24  ;;  %v444_v34 = vmul.f32 %v442_v23, %v438_v25 }
 0x122   :  { %v447_v37 = vadd.f32 %v444_v34, %v443_v26  ;;  %v445_v42 = vadd.f32 %v443_v26, %v437_v24  ;;  %v446_v45 = vadd.f32 %v444_v34, %v438_v25 }
 0x124   :  { %v448_v38 = vadd.f32 1.0, %v447_v37 }
 0x126   :  { %730 = vrcp.f32 %v448_v38 }
 0x133   :  { %v731_v39 = vpop.eup %730 }
 0x134   :  { %v450_v40 = vmul.f32 %v731_v39, %v448_v38 }
 0x136   :  { %v451_v41 = vsub.f32 2.0, %v450_v40 }
 0x138   :  { %v452_v51 = vmul.f32 %v731_v39, %v451_v41 }
 0x13a   :  { %v453_v54 = vmul.f32 %v452_v51, %v445_v42  ;;  %v454_v36 = vmul.f32 %v452_v51, %v446_v45 }
 0x13c   :  { %v455_v57 = vsub.f32 %v454_v36, %v855_v47  ;;  %v456_v14 = vsub.f32 %v453_v54, %v852_v46  ;;  %v467_v55 = vsub.f32 %v454_v36, %v870_v58  ;;  %v468_v27 = vsub.f32 %v453_v54, %v873_v59 }
 0x13d   :  { %v483_v56 = vmul.f32 %v453_v54, %v960_v32  ;;  %v484_v4 = vmul.f32 %v454_v36, %v963_v33 }
 0x13e   :  { %v457_v6 = vmul.f32 %v455_v57, %v865_v53  ;;  %v458_v60 = vmul.f32 %v456_v14, %v862_v52  ;;  %v469_v43 = vmul.f32 %v467_v55, %v865_v53  ;;  %v470_v35 = vmul.f32 %v468_v27, %v862_v52 }
 0x13f   :  { %v485_v62 = vadd.f32 %v483_v56, %v919_v15  ;;  %v486_v63 = vadd.f32 %v484_v4, %v948_v28  ;;  %v505_v56 = vld [vmem:[%s1257_s1 + $0x4] sm:$0x1]  ;;  %v506_v4 = vld [vmem:[%s1257_s1 + $0xc] sm:$0x1] }
 0x140   :  { %v459_v2 = vmax.f32 %v457_v6, 0.0  ;;  %v460_v3 = vmax.f32 %v458_v60, 0.0  ;;  %v471_v5 = vmax.f32 %v469_v43, 0.0  ;;  %v472_v7 = vmax.f32 %v470_v35, 0.0 }
 0x142   :  { %v461_v8 = vsub.f32 %v879_v61, %v459_v2  ;;  %v462_v10 = vsub.f32 %v903_v9, %v460_v3  ;;  %v473_v18 = vsub.f32 %v982_v0, %v471_v5  ;;  %v474_v23 = vsub.f32 %v985_v1, %v472_v7 }
 0x144   :  { %v463_v13 = vmax.f32 %v461_v8, 0.0  ;;  %v464_v16 = vmax.f32 %v462_v10, 0.0  ;;  %v475_v25 = vmax.f32 %v473_v18, 0.0  ;;  %v476_v28 = vmax.f32 %v474_v23, 0.0 }
 0x146   :  { %v465_v24 = vsub.f32 %v974_v49, %v463_v13  ;;  %v466_v15 = vsub.f32 %v977_v50, %v464_v16  ;;  %v477_v39 = vsub.f32 %v990_v11, %v475_v25  ;;  %v478_v40 = vsub.f32 %v993_v12, %v476_v28 }
 0x148   :  { %v487_v26 = vsub.f32 %v485_v62, %v465_v24  ;;  %v488_v34 = vsub.f32 %v486_v63, %v466_v15 }
 0x14a   :  { %v489_v37 = vmax.f32 %v487_v26, 0.0  ;;  %v490_v38 = vmax.f32 %v488_v34, 0.0 }
 0x14c   :  { %v491_v41 = vmul.f32 %v489_v37, %v996_v17  ;;  %v492_v42 = vmul.f32 %v490_v38, %v999_v22 }
 0x14e   :  { %v493_v45 = vadd.f32 %v491_v41, %v477_v39  ;;  %v494_v51 = vadd.f32 %v492_v42, %v478_v40 }
 0x150   :  { %v495_v54 = vsub.f32 %v493_v45, %v465_v24  ;;  %v496_v36 = vsub.f32 %v494_v51, %v466_v15 }
 0x152   :  { %v497_v57 = vmax.f32 %v495_v54, 0.0  ;;  %v498_v14 = vmax.f32 %v496_v36, 0.0 }
 0x154   :  { %v499_v55 = vmul.f32 %v497_v57, %v1006_v44  ;;  %v500_v27 = vmul.f32 %v498_v14, %v1009_v48 }
 0x156   :  { %v501_v6 = vadd.f32 %v499_v55, %v477_v39  ;;  %v502_v60 = vadd.f32 %v500_v27, %v478_v40 }
 0x158   :  { %503 = vst.msk [vmem:[%s1258_s3 + $0x4] sm:$0x1] %vm246_vm0, %v501_v6  ;;  %504 = vst.msk [vmem:[%s1258_s3 + $0xc] sm:$0x1] %vm246_vm0, %v502_v60  ;;  %v507_v43 = vmul.f32 %v505_v56, %v501_v6  ;;  %v508_v35 = vmul.f32 %v506_v4, %v502_v60 }
 0x15a   :  { %v511_v62 = vadd.f32 %v508_v35, %v507_v43  ;;  %v509_v7 = vadd.f32 %v507_v43, %v501_v6  ;;  %v510_v8 = vadd.f32 %v508_v35, %v502_v60 }
 0x15c   :  { %v512_v63 = vadd.f32 1.0, %v511_v62 }
 0x15e   :  { %732 = vrcp.f32 %v512_v63 }
 0x16b   :  { %v733_v2 = vpop.eup %732 }
 0x16c   :  { %v514_v3 = vmul.f32 %v733_v2, %v512_v63 }
 0x16e   :  { %v515_v5 = vsub.f32 2.0, %v514_v3 }
 0x170   :  { %v516_v10 = vmul.f32 %v733_v2, %v515_v5 }
 0x172   :  { %v517_v13 = vmul.f32 %v516_v10, %v509_v7  ;;  %v518_v16 = vmul.f32 %v516_v10, %v510_v8 }
 0x174   :  { %v519_v18 = vsub.f32 %v518_v16, %v855_v47  ;;  %v520_v23 = vsub.f32 %v517_v13, %v852_v46  ;;  %v531_v24 = vsub.f32 %v518_v16, %v870_v58  ;;  %v532_v15 = vsub.f32 %v517_v13, %v873_v59 }
 0x175   :  { %v547_v25 = vmul.f32 %v517_v13, %v960_v32  ;;  %v548_v28 = vmul.f32 %v518_v16, %v963_v33 }
 0x176   :  { %v521_v26 = vmul.f32 %v519_v18, %v865_v53  ;;  %v522_v34 = vmul.f32 %v520_v23, %v862_v52  ;;  %v533_v37 = vmul.f32 %v531_v24, %v865_v53  ;;  %v534_v38 = vmul.f32 %v532_v15, %v862_v52  ;;  %v569_v24 = vld [vmem:[%s1257_s1 + $0x5] sm:$0x1]  ;;  %v570_v15 = vld [vmem:[%s1257_s1 + $0xd] sm:$0x1] }
 0x177   :  { %v549_v39 = vadd.f32 %v547_v25, %v929_v19  ;;  %v550_v40 = vadd.f32 %v548_v28, %v951_v29 }
 0x178   :  { %v523_v41 = vmax.f32 %v521_v26, 0.0  ;;  %v524_v42 = vmax.f32 %v522_v34, 0.0  ;;  %v535_v45 = vmax.f32 %v533_v37, 0.0  ;;  %v536_v51 = vmax.f32 %v534_v38, 0.0 }
 0x17a   :  { %v525_v54 = vsub.f32 %v879_v61, %v523_v41  ;;  %v526_v36 = vsub.f32 %v903_v9, %v524_v42  ;;  %v537_v55 = vsub.f32 %v982_v0, %v535_v45  ;;  %v538_v27 = vsub.f32 %v985_v1, %v536_v51 }
 0x17c   :  { %v527_v57 = vmax.f32 %v525_v54, 0.0  ;;  %v528_v14 = vmax.f32 %v526_v36, 0.0  ;;  %v539_v4 = vmax.f32 %v537_v55, 0.0  ;;  %v540_v29 = vmax.f32 %v538_v27, 0.0 }
 0x17e   :  { %v529_v56 = vsub.f32 %v974_v49, %v527_v57  ;;  %v530_v19 = vsub.f32 %v977_v50, %v528_v14  ;;  %v541_v62 = vsub.f32 %v990_v11, %v539_v4  ;;  %v542_v63 = vsub.f32 %v993_v12, %v540_v29 }
 0x180   :  { %v551_v6 = vsub.f32 %v549_v39, %v529_v56  ;;  %v552_v60 = vsub.f32 %v550_v40, %v530_v19 }
 0x182   :  { %v553_v43 = vmax.f32 %v551_v6, 0.0  ;;  %v554_v35 = vmax.f32 %v552_v60, 0.0 }
 0x184   :  { %v555_v2 = vmul.f32 %v553_v43, %v996_v17  ;;  %v556_v3 = vmul.f32 %v554_v35, %v999_v22 }
 0x186   :  { %v557_v5 = vadd.f32 %v555_v2, %v541_v62  ;;  %v558_v7 = vadd.f32 %v556_v3, %v542_v63 }
 0x188   :  { %v559_v8 = vsub.f32 %v557_v5, %v529_v56  ;;  %v560_v10 = vsub.f32 %v558_v7, %v530_v19 }
 0x18a   :  { %v561_v13 = vmax.f32 %v559_v8, 0.0  ;;  %v562_v16 = vmax.f32 %v560_v10, 0.0 }
 0x18c   :  { %v563_v18 = vmul.f32 %v561_v13, %v1006_v44  ;;  %v564_v23 = vmul.f32 %v562_v16, %v1009_v48 }
 0x18e   :  { %v565_v25 = vadd.f32 %v563_v18, %v541_v62  ;;  %v566_v28 = vadd.f32 %v564_v23, %v542_v63 }
 0x190   :  { %567 = vst.msk [vmem:[%s1258_s3 + $0x5] sm:$0x1] %vm246_vm0, %v565_v25  ;;  %568 = vst.msk [vmem:[%s1258_s3 + $0xd] sm:$0x1] %vm246_vm0, %v566_v28  ;;  %v571_v26 = vmul.f32 %v569_v24, %v565_v25  ;;  %v572_v34 = vmul.f32 %v570_v15, %v566_v28 }
 0x192   :  { %v575_v37 = vadd.f32 %v572_v34, %v571_v26  ;;  %v573_v42 = vadd.f32 %v571_v26, %v565_v25  ;;  %v574_v45 = vadd.f32 %v572_v34, %v566_v28 }
 0x194   :  { %v576_v38 = vadd.f32 1.0, %v575_v37 }
 0x196   :  { %734 = vrcp.f32 %v576_v38 }
 0x1a3   :  { %v735_v39 = vpop.eup %734 }
 0x1a4   :  { %v578_v40 = vmul.f32 %v735_v39, %v576_v38 }
 0x1a6   :  { %v579_v41 = vsub.f32 2.0, %v578_v40 }
 0x1a8   :  { %v580_v51 = vmul.f32 %v735_v39, %v579_v41 }
 0x1aa   :  { %v581_v54 = vmul.f32 %v580_v51, %v573_v42  ;;  %v582_v36 = vmul.f32 %v580_v51, %v574_v45 }
 0x1ac   :  { %v583_v57 = vsub.f32 %v582_v36, %v855_v47  ;;  %v584_v14 = vsub.f32 %v581_v54, %v852_v46  ;;  %v595_v55 = vsub.f32 %v582_v36, %v870_v58  ;;  %v596_v27 = vsub.f32 %v581_v54, %v873_v59 }
 0x1ad   :  { %v611_v56 = vmul.f32 %v581_v54, %v960_v32  ;;  %v612_v19 = vmul.f32 %v582_v36, %v963_v33 }
 0x1ae   :  { %v585_v4 = vmul.f32 %v583_v57, %v865_v53  ;;  %v586_v29 = vmul.f32 %v584_v14, %v862_v52  ;;  %v597_v6 = vmul.f32 %v595_v55, %v865_v53  ;;  %v598_v60 = vmul.f32 %v596_v27, %v862_v52  ;;  %v633_v57 = vld [vmem:[%s1257_s1 + $0x6] sm:$0x1]  ;;  %v634_v14 = vld [vmem:[%s1257_s1 + $0xe] sm:$0x1] }
 0x1af   :  { %v613_v43 = vadd.f32 %v611_v56, %v932_v20  ;;  %v614_v35 = vadd.f32 %v612_v19, %v954_v30 }
 0x1b0   :  { %v587_v62 = vmax.f32 %v585_v4, 0.0  ;;  %v588_v63 = vmax.f32 %v586_v29, 0.0  ;;  %v599_v2 = vmax.f32 %v597_v6, 0.0  ;;  %v600_v3 = vmax.f32 %v598_v60, 0.0 }
 0x1b2   :  { %v589_v5 = vsub.f32 %v879_v61, %v587_v62  ;;  %v590_v7 = vsub.f32 %v903_v9, %v588_v63  ;;  %v601_v13 = vsub.f32 %v982_v0, %v599_v2  ;;  %v602_v16 = vsub.f32 %v985_v1, %v600_v3 }
 0x1b4   :  { %v591_v8 = vmax.f32 %v589_v5, 0.0  ;;  %v592_v10 = vmax.f32 %v590_v7, 0.0  ;;  %v603_v23 = vmax.f32 %v601_v13, 0.0  ;;  %v604_v30 = vmax.f32 %v602_v16, 0.0 }
 0x1b6   :  { %v593_v18 = vsub.f32 %v974_v49, %v591_v8  ;;  %v594_v20 = vsub.f32 %v977_v50, %v592_v10  ;;  %v605_v26 = vsub.f32 %v990_v11, %v603_v23  ;;  %v606_v34 = vsub.f32 %v993_v12, %v604_v30 }
 0x1b8   :  { %v615_v24 = vsub.f32 %v613_v43, %v593_v18  ;;  %v616_v15 = vsub.f32 %v614_v35, %v594_v20 }
 0x1ba   :  { %v617_v25 = vmax.f32 %v615_v24, 0.0  ;;  %v618_v28 = vmax.f32 %v616_v15, 0.0 }
 0x1bc   :  { %v619_v37 = vmul.f32 %v617_v25, %v996_v17  ;;  %v620_v38 = vmul.f32 %v618_v28, %v999_v22 }
 0x1be   :  { %v621_v39 = vadd.f32 %v619_v37, %v605_v26  ;;  %v622_v40 = vadd.f32 %v620_v38, %v606_v34 }
 0x1c0   :  { %v623_v41 = vsub.f32 %v621_v39, %v593_v18  ;;  %v624_v42 = vsub.f32 %v622_v40, %v594_v20 }
 0x1c2   :  { %v625_v45 = vmax.f32 %v623_v41, 0.0  ;;  %v626_v51 = vmax.f32 %v624_v42, 0.0 }
 0x1c4   :  { %v627_v54 = vmul.f32 %v625_v45, %v1006_v44  ;;  %v628_v36 = vmul.f32 %v626_v51, %v1009_v48 }
 0x1c6   :  { %v629_v55 = vadd.f32 %v627_v54, %v605_v26  ;;  %v630_v27 = vadd.f32 %v628_v36, %v606_v34 }
 0x1c8   :  { %631 = vst.msk [vmem:[%s1258_s3 + $0x6] sm:$0x1] %vm246_vm0, %v629_v55  ;;  %632 = vst.msk [vmem:[%s1258_s3 + $0xe] sm:$0x1] %vm246_vm0, %v630_v27  ;;  %v635_v56 = vmul.f32 %v633_v57, %v629_v55  ;;  %v636_v19 = vmul.f32 %v634_v14, %v630_v27 }
 0x1ca   :  { %v639_v4 = vadd.f32 %v636_v19, %v635_v56  ;;  %v637_v35 = vadd.f32 %v635_v56, %v629_v55  ;;  %v638_v62 = vadd.f32 %v636_v19, %v630_v27 }
 0x1cc   :  { %v640_v29 = vadd.f32 1.0, %v639_v4 }
 0x1ce   :  { %736 = vrcp.f32 %v640_v29 }
 0x1db   :  { %v737_v6 = vpop.eup %736 }
 0x1dc   :  { %v642_v60 = vmul.f32 %v737_v6, %v640_v29 }
 0x1de   :  { %v643_v43 = vsub.f32 2.0, %v642_v60 }
 0x1e0   :  { %v644_v63 = vmul.f32 %v737_v6, %v643_v43 }
 0x1e2   :  { %v645_v2 = vmul.f32 %v644_v63, %v637_v35  ;;  %v646_v3 = vmul.f32 %v644_v63, %v638_v62 }
 0x1e4   :  { %v647_v5 = vsub.f32 %v646_v3, %v855_v47  ;;  %v648_v7 = vsub.f32 %v645_v2, %v852_v46  ;;  %v659_v8 = vsub.f32 %v646_v3, %v870_v58  ;;  %v660_v10 = vsub.f32 %v645_v2, %v873_v59 }
 0x1e5   :  { %v675_v13 = vmul.f32 %v645_v2, %v960_v32  ;;  %v676_v16 = vmul.f32 %v646_v3, %v963_v33 }
 0x1e6   :  { %v649_v18 = vmul.f32 %v647_v5, %v865_v53  ;;  %v650_v20 = vmul.f32 %v648_v7, %v862_v52  ;;  %v661_v23 = vmul.f32 %v659_v8, %v865_v53  ;;  %v662_v30 = vmul.f32 %v660_v10, %v862_v52 }
 0x1e7   :  { %v677_v47 = vadd.f32 %v675_v13, %v935_v21  ;;  %v678_v46 = vadd.f32 %v676_v16, %v957_v31 }
 0x1e8   :  { %v651_v24 = vmax.f32 %v649_v18, 0.0  ;;  %v652_v58 = vmax.f32 %v650_v20, 0.0  ;;  %v663_v15 = vmax.f32 %v661_v23, 0.0  ;;  %v664_v59 = vmax.f32 %v662_v30, 0.0 }
 0x1ea   :  { %v653_v32 = vsub.f32 %v879_v61, %v651_v24  ;;  %v654_v33 = vsub.f32 %v903_v9, %v652_v58  ;;  %v665_v26 = vsub.f32 %v982_v0, %v663_v15  ;;  %v666_v53 = vsub.f32 %v985_v1, %v664_v59 }
 0x1ec   :  { %v655_v25 = vmax.f32 %v653_v32, 0.0  ;;  %v656_v28 = vmax.f32 %v654_v33, 0.0  ;;  %v667_v34 = vmax.f32 %v665_v26, 0.0  ;;  %v668_v31 = vmax.f32 %v666_v53, 0.0 }
 0x1ee   :  { %v657_v52 = vsub.f32 %v974_v49, %v655_v25  ;;  %v658_v21 = vsub.f32 %v977_v50, %v656_v28  ;;  %v669_v61 = vsub.f32 %v990_v11, %v667_v34  ;;  %v670_v9 = vsub.f32 %v993_v12, %v668_v31 }
 0x1f0   :  { %v679_v37 = vsub.f32 %v677_v47, %v657_v52  ;;  %v680_v38 = vsub.f32 %v678_v46, %v658_v21 }
 0x1f2   :  { %v681_v39 = vmax.f32 %v679_v37, 0.0  ;;  %v682_v40 = vmax.f32 %v680_v38, 0.0 }
 0x1f4   :  { %v683_v41 = vmul.f32 %v681_v39, %v996_v17  ;;  %v684_v0 = vmul.f32 %v682_v40, %v999_v22 }
 0x1f6   :  { %v685_v42 = vadd.f32 %v683_v41, %v669_v61  ;;  %v686_v1 = vadd.f32 %v684_v0, %v670_v9 }
 0x1f8   :  { %v687_v45 = vsub.f32 %v685_v42, %v657_v52  ;;  %v688_v49 = vsub.f32 %v686_v1, %v658_v21 }
 0x1fa   :  { %v689_v51 = vmax.f32 %v687_v45, 0.0  ;;  %v690_v50 = vmax.f32 %v688_v49, 0.0 }
 0x1fc   :  { %v691_v54 = vmul.f32 %v689_v51, %v1006_v44  ;;  %v692_v36 = vmul.f32 %v690_v50, %v1009_v48 }
 0x1fe   :  { %v693_v57 = vadd.f32 %v691_v54, %v669_v61  ;;  %v694_v14 = vadd.f32 %v692_v36, %v670_v9 }
 0x200   :  { %695 = vst.msk [vmem:[%s1258_s3 + $0x7] sm:$0x1] %vm246_vm0, %v693_v57  ;;  %696 = vst.msk [vmem:[%s1258_s3 + $0xf] sm:$0x1] %vm246_vm0, %v694_v14 }

</bundles_post_ra>
